<compile_context>
chip_gen: v7x
topology: tpu7x:2x2x1
jax: 0.10.0
libtpu: 0.0.40
codegen_flags: <defaults>
</compile_context>

<pallas_src>
import functools

import jax
import jax.numpy as jnp
from jax.experimental import pallas as pl
from jax.experimental.pallas import tpu as pltpu

EPS = 1e-5


def _elu(y):
    # exp(y) - 1 (not expm1) to stay on known-good Mosaic lowerings; the
    # difference vs torch's ELU is far below the 1e-4 tolerance used here.
    return jnp.where(y > 0, y, jnp.exp(y) - 1.0)


def _instance_norm_lane_dense(y, proj, n_spatial):
    """InstanceNorm2d (no affine, biased var, eps=1e-5) on a lane-dense (Hd, Wd*C) tile.

    proj is the (Wd*C, Wd*C) channel projector: proj[i, j] = 1 iff i % C == j % C,
    so `row_sums @ proj` gives the per-channel sum already spread back to every
    lane of that channel (no relayout to a C=8 lane dim needed).
    """
    s = jnp.sum(y, axis=0, keepdims=True)            # (1, Wd*C)
    s2 = jnp.sum(y * y, axis=0, keepdims=True)       # (1, Wd*C)
    sum_c = jnp.dot(s, proj, preferred_element_type=jnp.float32)
    sq_c = jnp.dot(s2, proj, preferred_element_type=jnp.float32)
    inv_n = 1.0 / float(n_spatial)
    mean = sum_c * inv_n
    var = sq_c * inv_n - mean * mean                 # single-pass variance
    inv = jax.lax.rsqrt(var + EPS)
    return (y - mean) * inv


def block_kernel(x_ref, b1_ref, b2_ref, p1_ref, p2_ref, out_ref, xp_ref, *,
                 H, W, C, dil):
    pad = 2 * dil
    H1 = H + pad          # conv1 output height
    W1 = W + pad          # conv1 output width

    x = x_ref[0]                                    # (H, W*C) lane-dense

    # H-direction zero padding into a small VMEM scratch (W/C padding is folded
    # into the banded weight matrices, so no padded copy is shipped from HBM).
    xp_ref[...] = jnp.zeros_like(xp_ref)
    xp_ref[pl.ds(pad, H), :] = x

    # conv1: padding=2*dil, dilation=dil -> 3 full-lane MXU matmuls (one per kh tap).
    y = jnp.zeros((H1, W1 * C), dtype=jnp.float32)
    for kh in range(3):
        y = y + jnp.dot(xp_ref[pl.ds(kh * dil, H1), :], b1_ref[kh],
                        preferred_element_type=jnp.float32)

    y = _instance_norm_lane_dense(y, p1_ref[...], H1 * W1)
    y = _elu(y)
    # TODO(synk): Dropout(0.15) implemented as eval-mode identity (no mask / 1/(1-p) scaling).

    # conv2: valid 3x3 dilated conv back to (H, W*C).
    z = jnp.zeros((H, W * C), dtype=jnp.float32)
    for kh in range(3):
        z = z + jnp.dot(y[kh * dil:kh * dil + H, :], b2_ref[kh],
                        preferred_element_type=jnp.float32)

    z = _instance_norm_lane_dense(z, p2_ref[...], H * W)
    z = z + x                                       # residual add (identity == input)
    out_ref[0] = _elu(z)


def _banded_tap(wt, kh, in_w, out_w, C, dil, pad):
    """Banded weight matrix for one kh tap.

    Returns B of shape (in_w*C, out_w*C) with
      B[wi*C + ci, wo*C + co] = wt[kh, kw, ci, co]  if wi == wo + kw*dil - pad,
    taps falling outside [0, in_w) are simply absent (== zero padding in W).
    """
    wi = jnp.arange(in_w)
    wo = jnp.arange(out_w)
    b = jnp.zeros((in_w * C, out_w * C), jnp.float32)
    for kw in range(3):
        sel = (wi[:, None] == (wo[None, :] + kw * dil - pad)).astype(jnp.float32)
        b = b + jnp.kron(sel, wt[kh, kw])
    return b


def _chan_projector(width, C):
    ch = jnp.arange(width * C) % C
    return (ch[:, None] == ch[None, :]).astype(jnp.float32)


def block_forward(x_nchw, w1, w2, dilation=1):
    """x_nchw: (N,C,H,W) f32; w1,w2: (C,C,3,3) f32 (PyTorch OIHW)."""
    N, C, H, W = x_nchw.shape
    pad = 2 * dilation
    H1, W1 = H + pad, W + pad

    # Lane-dense layout: (N, H, W*C).
    x_ld = jnp.transpose(x_nchw, (0, 2, 3, 1)).astype(jnp.float32).reshape(N, H, W * C)

    w1t = jnp.transpose(w1, (2, 3, 1, 0)).astype(jnp.float32)   # (kh, kw, Cin, Cout)
    w2t = jnp.transpose(w2, (2, 3, 1, 0)).astype(jnp.float32)
    b1 = jnp.stack([_banded_tap(w1t, kh, W, W1, C, dilation, pad) for kh in range(3)])
    b2 = jnp.stack([_banded_tap(w2t, kh, W1, W, C, dilation, 0) for kh in range(3)])
    p1 = _chan_projector(W1, C)
    p2 = _chan_projector(W, C)

    kernel = functools.partial(block_kernel, H=H, W=W, C=C, dil=dilation)
    out_ld = pl.pallas_call(
        kernel,
        out_shape=jax.ShapeDtypeStruct((N, H, W * C), jnp.float32),
        grid_spec=pltpu.PrefetchScalarGridSpec(
            num_scalar_prefetch=0,
            grid=(N,),
            in_specs=[
                pl.BlockSpec((1, H, W * C), lambda n: (n, 0, 0)),
                pl.BlockSpec((3, W * C, W1 * C), lambda n: (0, 0, 0)),
                pl.BlockSpec((3, W1 * C, W * C), lambda n: (0, 0, 0)),
                pl.BlockSpec((W1 * C, W1 * C), lambda n: (0, 0)),
                pl.BlockSpec((W * C, W * C), lambda n: (0, 0)),
            ],
            out_specs=pl.BlockSpec((1, H, W * C), lambda n: (n, 0, 0)),
            scratch_shapes=[pltpu.VMEM((H + 4 * dilation, W * C), jnp.float32)],
        ),
        compiler_params=pltpu.CompilerParams(dimension_semantics=("parallel",)),
    )(x_ld, b1, b2, p1, p2)

    return jnp.transpose(out_ld.reshape(N, H, W, C), (0, 3, 1, 2))     # back to NCHW


def ref_forward(x, w1, w2, dilation=1):
    """Pure-JAX reference (NCHW), mirrors the PyTorch module in eval mode."""
    dn = ("NCHW", "OIHW", "NCHW")
    pad = 2 * dilation

    def inorm(y):
        m = jnp.mean(y, axis=(2, 3), keepdims=True)
        v = jnp.mean((y - m) ** 2, axis=(2, 3), keepdims=True)
        return (y - m) / jnp.sqrt(v + EPS)

    def elu(y):
        return jnp.where(y > 0, y, jnp.exp(y) - 1.0)

    h = jax.lax.conv_general_dilated(
        x, w1, (1, 1), ((pad, pad), (pad, pad)),
        rhs_dilation=(dilation, dilation), dimension_numbers=dn)
    h = elu(inorm(h))
    h = jax.lax.conv_general_dilated(
        h, w2, (1, 1), ((0, 0), (0, 0)),
        rhs_dilation=(dilation, dilation), dimension_numbers=dn)
    h = inorm(h) + x
    return elu(h)


if __name__ == "__main__":
    key = jax.random.PRNGKey(0)
    k_x, k_w1, k_w2 = jax.random.split(key, 3)

    N, C, H, W = 2, 8, 16, 16          # intermediate_channels = 8 -> W*C = 128 lanes
    dilation = 1

    x = jax.random.normal(k_x, (N, C, H, W), dtype=jnp.float32)
    w1 = 0.1 * jax.random.normal(k_w1, (C, C, 3, 3), dtype=jnp.float32)
    w2 = 0.1 * jax.random.normal(k_w2, (C, C, 3, 3), dtype=jnp.float32)

    out = jax.block_until_ready(block_forward(x, w1, w2, dilation=dilation))
    ref = jax.block_until_ready(ref_forward(x, w1, w2, dilation=dilation))

    assert out.shape == (N, C, H, W)
    assert jnp.allclose(out, ref, atol=1e-4, rtol=1e-4), float(jnp.max(jnp.abs(out - ref)))

    print("KERNEL_OK")
</pallas_src>

<mosaic_0001>
module attributes {stable_mosaic.version = 11 : i64} {
  func.func @block_kernel(%arg0: i32, %arg1: memref<1x16x128xf32, #tpu.memory_space<vmem>>, %arg2: memref<3x128x144xf32, #tpu.memory_space<vmem>>, %arg3: memref<3x144x128xf32, #tpu.memory_space<vmem>>, %arg4: memref<144x144xf32, #tpu.memory_space<vmem>>, %arg5: memref<128x128xf32, #tpu.memory_space<vmem>>, %arg6: memref<1x16x128xf32, #tpu.memory_space<vmem>>, %arg7: memref<20x128xf32, #tpu.memory_space<vmem>>) attributes {dimension_semantics = [#tpu.dimension_semantics<parallel>], iteration_bounds = array<i64: 2>, scalar_prefetch = 0 : i64, scratch_operands = 1 : i64, tpu.core_type = #tpu.core_type<tc>, window_params = [{transform_indices = @transform_0, window_bounds = array<i64: 1, 16, 128>}, {pipeline_mode = #tpu.pipeline_mode<synchronous>, transform_indices = @transform_1, window_bounds = array<i64: 3, 128, 144>}, {pipeline_mode = #tpu.pipeline_mode<synchronous>, transform_indices = @transform_2, window_bounds = array<i64: 3, 144, 128>}, {pipeline_mode = #tpu.pipeline_mode<synchronous>, transform_indices = @transform_3, window_bounds = array<i64: 144, 144>}, {pipeline_mode = #tpu.pipeline_mode<synchronous>, transform_indices = @transform_4, window_bounds = array<i64: 128, 128>}, {transform_indices = @transform_5, window_bounds = array<i64: 1, 16, 128>}]} {
    %c0 = arith.constant 0 : index
    %c0_0 = arith.constant 0 : index
    %c0_1 = arith.constant 0 : index
    %0 = vector.load %arg1[%c0, %c0_0, %c0_1] : memref<1x16x128xf32, #tpu.memory_space<vmem>>, vector<1x16x128xf32>
    %1 = vector.shape_cast %0 : vector<1x16x128xf32> to vector<16x128xf32>
    %cst = arith.constant 0.000000e+00 : f32
    %2 = vector.broadcast %cst : f32 to vector<20x128xf32>
    %c0_2 = arith.constant 0 : index
    %c0_3 = arith.constant 0 : index
    %3 = vector.load %arg7[%c0_2, %c0_3] : memref<20x128xf32, #tpu.memory_space<vmem>>, vector<20x128xf32>
    tpu.vector_store %arg7[%c0_2, %c0_3], %2 {strides = array<i32>} : memref<20x128xf32, #tpu.memory_space<vmem>>, vector<20x128xf32>,
    %c2 = arith.constant 2 : index
    %c0_4 = arith.constant 0 : index
    %4 = vector.load %arg7[%c2, %c0_4] : memref<20x128xf32, #tpu.memory_space<vmem>>, vector<16x128xf32>
    tpu.vector_store %arg7[%c2, %c0_4], %1 {strides = array<i32>} : memref<20x128xf32, #tpu.memory_space<vmem>>, vector<16x128xf32>,
    %cst_5 = arith.constant 0.000000e+00 : f32
    %5 = vector.broadcast %cst_5 : f32 to vector<18x144xf32>
    %c0_6 = arith.constant 0 : index
    %c0_7 = arith.constant 0 : index
    %6 = vector.load %arg7[%c0_6, %c0_7] : memref<20x128xf32, #tpu.memory_space<vmem>>, vector<18x128xf32>
    %c0_8 = arith.constant 0 : index
    %c0_9 = arith.constant 0 : index
    %c0_10 = arith.constant 0 : index
    %7 = vector.load %arg2[%c0_8, %c0_9, %c0_10] : memref<3x128x144xf32, #tpu.memory_space<vmem>>, vector<1x128x144xf32>
    %8 = vector.shape_cast %7 : vector<1x128x144xf32> to vector<128x144xf32>
    %cst_11 = arith.constant dense<0.000000e+00> : vector<18x144xf32>
    %9 = tpu.matmul %6, %8, %cst_11 {dimension_numbers = #tpu.dot_dimension_numbers<[1], [0], [0], [1], [0, 0, 1, 1], [], []>} : vector<18x128xf32>, vector<128x144xf32>, vector<18x144xf32> -> vector<18x144xf32>
    %10 = arith.addf %5, %9 : vector<18x144xf32>
    %c1 = arith.constant 1 : index
    %c0_12 = arith.constant 0 : index
    %11 = vector.load %arg7[%c1, %c0_12] : memref<20x128xf32, #tpu.memory_space<vmem>>, vector<18x128xf32>
    %c1_13 = arith.constant 1 : index
    %c0_14 = arith.constant 0 : index
    %c0_15 = arith.constant 0 : index
    %12 = vector.load %arg2[%c1_13, %c0_14, %c0_15] : memref<3x128x144xf32, #tpu.memory_space<vmem>>, vector<1x128x144xf32>
    %13 = vector.shape_cast %12 : vector<1x128x144xf32> to vector<128x144xf32>
    %cst_16 = arith.constant dense<0.000000e+00> : vector<18x144xf32>
    %14 = tpu.matmul %11, %13, %cst_16 {dimension_numbers = #tpu.dot_dimension_numbers<[1], [0], [0], [1], [0, 0, 1, 1], [], []>} : vector<18x128xf32>, vector<128x144xf32>, vector<18x144xf32> -> vector<18x144xf32>
    %15 = arith.addf %10, %14 : vector<18x144xf32>
    %c2_17 = arith.constant 2 : index
    %c0_18 = arith.constant 0 : index
    %16 = vector.load %arg7[%c2_17, %c0_18] : memref<20x128xf32, #tpu.memory_space<vmem>>, vector<18x128xf32>
    %c2_19 = arith.constant 2 : index
    %c0_20 = arith.constant 0 : index
    %c0_21 = arith.constant 0 : index
    %17 = vector.load %arg2[%c2_19, %c0_20, %c0_21] : memref<3x128x144xf32, #tpu.memory_space<vmem>>, vector<1x128x144xf32>
    %18 = vector.shape_cast %17 : vector<1x128x144xf32> to vector<128x144xf32>
    %cst_22 = arith.constant dense<0.000000e+00> : vector<18x144xf32>
    %19 = tpu.matmul %16, %18, %cst_22 {dimension_numbers = #tpu.dot_dimension_numbers<[1], [0], [0], [1], [0, 0, 1, 1], [], []>} : vector<18x128xf32>, vector<128x144xf32>, vector<18x144xf32> -> vector<18x144xf32>
    %20 = arith.addf %15, %19 : vector<18x144xf32>
    %c0_23 = arith.constant 0 : index
    %c0_24 = arith.constant 0 : index
    %21 = vector.load %arg4[%c0_23, %c0_24] : memref<144x144xf32, #tpu.memory_space<vmem>>, vector<144x144xf32>
    %cst_25 = arith.constant dense<0.000000e+00> : vector<144xf32>
    %22 = vector.multi_reduction <add>, %20, %cst_25 [0] : vector<18x144xf32> to vector<144xf32>
    %23 = vector.shape_cast %22 : vector<144xf32> to vector<1x144xf32>
    %24 = arith.mulf %20, %20 : vector<18x144xf32>
    %cst_26 = arith.constant dense<0.000000e+00> : vector<144xf32>
    %25 = vector.multi_reduction <add>, %24, %cst_26 [0] : vector<18x144xf32> to vector<144xf32>
    %26 = vector.shape_cast %25 : vector<144xf32> to vector<1x144xf32>
    %cst_27 = arith.constant dense<0.000000e+00> : vector<1x144xf32>
    %27 = tpu.matmul %23, %21, %cst_27 {dimension_numbers = #tpu.dot_dimension_numbers<[1], [0], [0], [1], [0, 0, 1, 1], [], []>} : vector<1x144xf32>, vector<144x144xf32>, vector<1x144xf32> -> vector<1x144xf32>
    %cst_28 = arith.constant dense<0.000000e+00> : vector<1x144xf32>
    %28 = tpu.matmul %26, %21, %cst_28 {dimension_numbers = #tpu.dot_dimension_numbers<[1], [0], [0], [1], [0, 0, 1, 1], [], []>} : vector<1x144xf32>, vector<144x144xf32>, vector<1x144xf32> -> vector<1x144xf32>
    %cst_29 = arith.constant 0.00308641978 : f32
    %29 = vector.broadcast %cst_29 : f32 to vector<1x144xf32>
    %30 = arith.mulf %27, %29 : vector<1x144xf32>
    %cst_30 = arith.constant 0.00308641978 : f32
    %31 = vector.broadcast %cst_30 : f32 to vector<1x144xf32>
    %32 = arith.mulf %28, %31 : vector<1x144xf32>
    %33 = arith.mulf %30, %30 : vector<1x144xf32>
    %34 = arith.subf %32, %33 : vector<1x144xf32>
    %cst_31 = arith.constant 9.99999974E-6 : f32
    %35 = vector.broadcast %cst_31 : f32 to vector<1x144xf32>
    %36 = arith.addf %34, %35 : vector<1x144xf32>
    %37 = math.rsqrt %36 : vector<1x144xf32>
    %38 = vector.broadcast %30 : vector<1x144xf32> to vector<18x144xf32>
    %39 = arith.subf %20, %38 : vector<18x144xf32>
    %40 = vector.broadcast %37 : vector<1x144xf32> to vector<18x144xf32>
    %41 = arith.mulf %39, %40 : vector<18x144xf32>
    %cst_32 = arith.constant 0.000000e+00 : f32
    %42 = vector.broadcast %cst_32 : f32 to vector<18x144xf32>
    %43 = arith.cmpf ogt, %41, %42 : vector<18x144xf32>
    %44 = math.exp %41 : vector<18x144xf32>
    %cst_33 = arith.constant 1.000000e+00 : f32
    %45 = vector.broadcast %cst_33 : f32 to vector<18x144xf32>
    %46 = arith.subf %44, %45 : vector<18x144xf32>
    %47 = arith.select %43, %41, %46 : vector<18x144xi1>, vector<18x144xf32>
    %cst_34 = arith.constant 0.000000e+00 : f32
    %48 = vector.broadcast %cst_34 : f32 to vector<16x128xf32>
    %49 = vector.extract_strided_slice %47 {offsets = [0, 0], sizes = [16, 144], strides = [1, 1]} : vector<18x144xf32> to vector<16x144xf32>
    %c0_35 = arith.constant 0 : index
    %c0_36 = arith.constant 0 : index
    %c0_37 = arith.constant 0 : index
    %50 = vector.load %arg3[%c0_35, %c0_36, %c0_37] : memref<3x144x128xf32, #tpu.memory_space<vmem>>, vector<1x144x128xf32>
    %51 = vector.shape_cast %50 : vector<1x144x128xf32> to vector<144x128xf32>
    %cst_38 = arith.constant dense<0.000000e+00> : vector<16x128xf32>
    %52 = tpu.matmul %49, %51, %cst_38 {dimension_numbers = #tpu.dot_dimension_numbers<[1], [0], [0], [1], [0, 0, 1, 1], [], []>} : vector<16x144xf32>, vector<144x128xf32>, vector<16x128xf32> -> vector<16x128xf32>
    %53 = arith.addf %48, %52 : vector<16x128xf32>
    %54 = vector.extract_strided_slice %47 {offsets = [1, 0], sizes = [16, 144], strides = [1, 1]} : vector<18x144xf32> to vector<16x144xf32>
    %c1_39 = arith.constant 1 : index
    %c0_40 = arith.constant 0 : index
    %c0_41 = arith.constant 0 : index
    %55 = vector.load %arg3[%c1_39, %c0_40, %c0_41] : memref<3x144x128xf32, #tpu.memory_space<vmem>>, vector<1x144x128xf32>
    %56 = vector.shape_cast %55 : vector<1x144x128xf32> to vector<144x128xf32>
    %cst_42 = arith.constant dense<0.000000e+00> : vector<16x128xf32>
    %57 = tpu.matmul %54, %56, %cst_42 {dimension_numbers = #tpu.dot_dimension_numbers<[1], [0], [0], [1], [0, 0, 1, 1], [], []>} : vector<16x144xf32>, vector<144x128xf32>, vector<16x128xf32> -> vector<16x128xf32>
    %58 = arith.addf %53, %57 : vector<16x128xf32>
    %59 = vector.extract_strided_slice %47 {offsets = [2, 0], sizes = [16, 144], strides = [1, 1]} : vector<18x144xf32> to vector<16x144xf32>
    %c2_43 = arith.constant 2 : index
    %c0_44 = arith.constant 0 : index
    %c0_45 = arith.constant 0 : index
    %60 = vector.load %arg3[%c2_43, %c0_44, %c0_45] : memref<3x144x128xf32, #tpu.memory_space<vmem>>, vector<1x144x128xf32>
    %61 = vector.shape_cast %60 : vector<1x144x128xf32> to vector<144x128xf32>
    %cst_46 = arith.constant dense<0.000000e+00> : vector<16x128xf32>
    %62 = tpu.matmul %59, %61, %cst_46 {dimension_numbers = #tpu.dot_dimension_numbers<[1], [0], [0], [1], [0, 0, 1, 1], [], []>} : vector<16x144xf32>, vector<144x128xf32>, vector<16x128xf32> -> vector<16x128xf32>
    %63 = arith.addf %58, %62 : vector<16x128xf32>
    %c0_47 = arith.constant 0 : index
    %c0_48 = arith.constant 0 : index
    %64 = vector.load %arg5[%c0_47, %c0_48] : memref<128x128xf32, #tpu.memory_space<vmem>>, vector<128x128xf32>
    %cst_49 = arith.constant dense<0.000000e+00> : vector<128xf32>
    %65 = vector.multi_reduction <add>, %63, %cst_49 [0] : vector<16x128xf32> to vector<128xf32>
    %66 = vector.shape_cast %65 : vector<128xf32> to vector<1x128xf32>
    %67 = arith.mulf %63, %63 : vector<16x128xf32>
    %cst_50 = arith.constant dense<0.000000e+00> : vector<128xf32>
    %68 = vector.multi_reduction <add>, %67, %cst_50 [0] : vector<16x128xf32> to vector<128xf32>
    %69 = vector.shape_cast %68 : vector<128xf32> to vector<1x128xf32>
    %cst_51 = arith.constant dense<0.000000e+00> : vector<1x128xf32>
    %70 = tpu.matmul %66, %64, %cst_51 {dimension_numbers = #tpu.dot_dimension_numbers<[1], [0], [0], [1], [0, 0, 1, 1], [], []>} : vector<1x128xf32>, vector<128x128xf32>, vector<1x128xf32> -> vector<1x128xf32>
    %cst_52 = arith.constant dense<0.000000e+00> : vector<1x128xf32>
    %71 = tpu.matmul %69, %64, %cst_52 {dimension_numbers = #tpu.dot_dimension_numbers<[1], [0], [0], [1], [0, 0, 1, 1], [], []>} : vector<1x128xf32>, vector<128x128xf32>, vector<1x128xf32> -> vector<1x128xf32>
    %cst_53 = arith.constant 3.906250e-03 : f32
    %72 = vector.broadcast %cst_53 : f32 to vector<1x128xf32>
    %73 = arith.mulf %70, %72 : vector<1x128xf32>
    %cst_54 = arith.constant 3.906250e-03 : f32
    %74 = vector.broadcast %cst_54 : f32 to vector<1x128xf32>
    %75 = arith.mulf %71, %74 : vector<1x128xf32>
    %76 = arith.mulf %73, %73 : vector<1x128xf32>
    %77 = arith.subf %75, %76 : vector<1x128xf32>
    %cst_55 = arith.constant 9.99999974E-6 : f32
    %78 = vector.broadcast %cst_55 : f32 to vector<1x128xf32>
    %79 = arith.addf %77, %78 : vector<1x128xf32>
    %80 = math.rsqrt %79 : vector<1x128xf32>
    %81 = vector.broadcast %73 : vector<1x128xf32> to vector<16x128xf32>
    %82 = arith.subf %63, %81 : vector<16x128xf32>
    %83 = vector.broadcast %80 : vector<1x128xf32> to vector<16x128xf32>
    %84 = arith.mulf %82, %83 : vector<16x128xf32>
    %85 = arith.addf %84, %1 : vector<16x128xf32>
    %cst_56 = arith.constant 0.000000e+00 : f32
    %86 = vector.broadcast %cst_56 : f32 to vector<16x128xf32>
    %87 = arith.cmpf ogt, %85, %86 : vector<16x128xf32>
    %88 = math.exp %85 : vector<16x128xf32>
    %cst_57 = arith.constant 1.000000e+00 : f32
    %89 = vector.broadcast %cst_57 : f32 to vector<16x128xf32>
    %90 = arith.subf %88, %89 : vector<16x128xf32>
    %91 = arith.select %87, %85, %90 : vector<16x128xi1>, vector<16x128xf32>
    %c0_58 = arith.constant 0 : index
    %c0_59 = arith.constant 0 : index
    %c0_60 = arith.constant 0 : index
    %92 = vector.load %arg6[%c0_58, %c0_59, %c0_60] : memref<1x16x128xf32, #tpu.memory_space<vmem>>, vector<1x16x128xf32>
    %93 = vector.shape_cast %92 : vector<1x16x128xf32> to vector<16x128xf32>
    %94 = vector.shape_cast %91 : vector<16x128xf32> to vector<1x16x128xf32>
    tpu.vector_store %arg6[%c0_58, %c0_59, %c0_60], %94 {strides = array<i32>} : memref<1x16x128xf32, #tpu.memory_space<vmem>>, vector<1x16x128xf32>,
    return
  }
  func.func @transform_0(%arg0: i32) -> (i32, i32, i32) {
    %c0_i32 = arith.constant 0 : i32
    %c0_i32_0 = arith.constant 0 : i32
    %c0_i32_1 = arith.constant 0 : i32
    return %arg0, %c0_i32, %c0_i32_0 : i32, i32, i32
  }
  func.func @transform_1(%arg0: i32) -> (i32, i32, i32) {
    %c0_i32 = arith.constant 0 : i32
    %c0_i32_0 = arith.constant 0 : i32
    %c0_i32_1 = arith.constant 0 : i32
    %c0_i32_2 = arith.constant 0 : i32
    return %c0_i32, %c0_i32_0, %c0_i32_1 : i32, i32, i32
  }
  func.func @transform_2(%arg0: i32) -> (i32, i32, i32) {
    %c0_i32 = arith.constant 0 : i32
    %c0_i32_0 = arith.constant 0 : i32
    %c0_i32_1 = arith.constant 0 : i32
    %c0_i32_2 = arith.constant 0 : i32
    return %c0_i32, %c0_i32_0, %c0_i32_1 : i32, i32, i32
  }
  func.func @transform_3(%arg0: i32) -> (i32, i32) {
    %c0_i32 = arith.constant 0 : i32
    %c0_i32_0 = arith.constant 0 : i32
    %c0_i32_1 = arith.constant 0 : i32
    return %c0_i32, %c0_i32_0 : i32, i32
  }
  func.func @transform_4(%arg0: i32) -> (i32, i32) {
    %c0_i32 = arith.constant 0 : i32
    %c0_i32_0 = arith.constant 0 : i32
    %c0_i32_1 = arith.constant 0 : i32
    return %c0_i32, %c0_i32_0 : i32, i32
  }
  func.func @transform_5(%arg0: i32) -> (i32, i32, i32) {
    %c0_i32 = arith.constant 0 : i32
    %c0_i32_0 = arith.constant 0 : i32
    %c0_i32_1 = arith.constant 0 : i32
    return %arg0, %c0_i32, %c0_i32_0 : i32, i32, i32
  }
}

</mosaic_0001>

<bundles_post_ra>
// kernel: tpu_custom_call.1
= control target key start
LH: loop header
LB: loop body
LE: loop exit
PB: predicated region body
PF: predicated region fallthrough
CT: control target
= control target key end

     0   :  { %10 = vsyncpa [#allocation4], 0  ;;  %s3180_s0 = inlined_call_operand.vmem [shape: f32[2,16,128], index: 0, kind: input, shape index: {}]   ;;  %s3181_s1 = inlined_call_operand.vmem [shape: f32[3,128,144], index: 1, kind: input, shape index: {}]   ;;  %s3182_s2 = inlined_call_operand.vmem [shape: f32[3,144,128], index: 2, kind: input, shape index: {}]   ;;  %s3183_s3 = inlined_call_operand.vmem [shape: f32[144,144], index: 3, kind: input, shape index: {}]   ;;  %s3184_s4 = inlined_call_operand.vmem [shape: f32[128,128], index: 4, kind: input, shape index: {}]   ;;  %s3185_s5 = inlined_call_operand.hbm [shape: f32[2,16,128], index: 5, kind: output, shape index: {}]  }
   0x1   :  { %12 = vsyncpa [#allocation4 + $0x1], 0  ;;  %s2221_s18 = smov 0   ;;  %s2223_s19 = smov 0  }
   0x2   :  { %s2225_s20 = smov 0   ;;  %s2227_s21 = smov 0  }
   0x3 LB: > { %s2242_s22 = sadd.s32 4294967295, %s2183_s21   ;;  %s1502_s23 = sadd.s32 4294967294, %s2183_s21   ;;  %s2183_s21 = sphi %s2227_s21, %s3191_s21   ;;  %s2179_s20 = sphi %s2225_s20, %s3190_s20   ;;  %s2175_s19 = sphi %s2223_s19, %s3189_s19   ;;  %s2171_s18 = sphi %s2221_s18, %s3188_s18  }
   0x4   : > { %s2246_s24 = sadd.s32 1, %s2183_s21   ;;  %s135_s25 = sadd.s32 1, %s2179_s20 }
   0x5   : > { %s132_s26 = ssub.s32 %s2183_s21, %s2246_s24  ;;  %p145_p0 = scmp.ne.s32.totalorder %s2179_s20, %s2175_s19 }
   0x6   : > { %p133_p1 = scmp.eq.s32.totalorder %s132_s26, 0  ;;  %p146_p2 = scmp.eq.s32.totalorder %s2242_s22, 1 }
   0x7   : > { %p151_p3 = scmp.ne.s32.totalorder %s2175_s19, %s2171_s18  ;;  %p152_p4 = scmp.eq.s32.totalorder %s1502_s23, 1 }
   0x8   : > { %s2257_s27 = scalar_select %p133_p1, %s2179_s20, %s135_s25  }
   0x9   : > { %p2259_p5 = por %p146_p2, %p145_p0  ;;  %p2263_p6 = por %p152_p4, %p151_p3 }
   0xa   : > { %p1505_p7 = scmp.ge.s32.totalorder %s2183_s21, 1  ;;  %p190_p8 = scmp.lt.s32.totalorder %s2183_s21, 3 }
   0xc   : > { %p191_p9 = pnand %p1505_p7, %p190_p8 }
   0xd   : > { %v1510_v0 = vld [vmem:[%s3181_s1 + $0x108] sm:$0xff] (!%p191_p9)  ;;  %v1512_v1 = vld [vmem:[%s3181_s1 + $0x118] sm:$0xff] (!%p191_p9)  ;;  %v1509_v2 = vld [vmem:[%s3181_s1 + $0x100] sm:$0xff] (!%p191_p9)  ;;  %p218_p10 = scmp.lt.s32.totalorder (!%p191_p9), %s2242_s22, 1  ;;  %v2185_v7 = vmov (!%p191_p9), 0.0   ;;  %vm638_vm0 = vcmask (!%p191_p9), 130048  }
   0xe   : > { %194 = sbr.rel (%p191_p9) target bundleno = 1241 (0x4d9), region = 40  ;;  %v1736_v3 = vpack.c.bf16 (!%p191_p9), %v1512_v1, %v1510_v0  ;;  %v1511_v4 = vld [vmem:[%s3181_s1 + $0x110] sm:$0xff] (!%p191_p9)  ;;  %v1514_v5 = vld [vmem:[%s3181_s1 + $0x128] sm:$0xff] (!%p191_p9)  ;;  %v1516_v6 = vld [vmem:[%s3181_s1 + $0x138] sm:$0xff] (!%p191_p9)  ;;  %365 = vmatprep.mubr.f32.mxu0 (!%p191_p9), %v2185_v7  ;;  %225 = vst [vmem:[#allocation2] sm:$0xff] (!%p191_p9), %v2185_v7  ;;  %vm629_vm1 = vcmask (!%p191_p9), 1041408  }
   0xf   : > { %226 = vst [vmem:[#allocation2 + $0x8] sm:$0xff] (!%p191_p9), %v2185_v7  ;;  %227 = vst [vmem:[#allocation2 + $0x10] sm:$0xf] (!%p191_p9), %v2185_v7  ;;  %v1738_v8 = vpack.c.bf16 (!%p191_p9), %v1511_v4, %v1509_v2  ;;  %v1740_v9 = vpack.c.bf16 (!%p191_p9), %v1516_v6, %v1514_v5  ;;  %v1513_v10 = vld [vmem:[%s3181_s1 + $0x120] sm:$0xff] (!%p191_p9)  ;;  %v1515_v11 = vld [vmem:[%s3181_s1 + $0x130] sm:$0xff] (!%p191_p9)  ;;  %vm642_vm2 = vcmask (!%p191_p9), 123904  }
  0x10   : > { %v1518_v12 = vld [vmem:[%s3181_s1 + $0x148] sm:$0xff] (!%p191_p9)  ;;  %1737 = vmatprep.subr.bf16.mxu0 (!%p191_p9), %v1736_v3  ;;  %v1520_v13 = vld [vmem:[%s3181_s1 + $0x158] sm:$0xff] (!%p191_p9)  ;;  %v1742_v14 = vpack.c.bf16 (!%p191_p9), %v1515_v11, %v1513_v10  ;;  %v1517_v16 = vld [vmem:[%s3181_s1 + $0x140] sm:$0xff] (!%p191_p9)  ;;  %vm938_vm3 = vcmask (!%p191_p9), 1046528   ;;  %vm1128_vm4 = vcmask (!%p191_p9), 1045504   ;;  %vm2187_vm11 = vmmov (!%p191_p9), 0  }
  0x11   : > { %1739 = vmatpush1.bf16.msra.mxu0 (!%p191_p9), %v1738_v8  ;;  %v1744_v15 = vpack.c.bf16 (!%p191_p9), %v1520_v13, %v1518_v12  ;;  %v1519_v17 = vld [vmem:[%s3181_s1 + $0x150] sm:$0xff] (!%p191_p9)  ;;  %v1522_v18 = vld [vmem:[%s3181_s1 + $0x168] sm:$0xff] (!%p191_p9)  ;;  %v1524_v19 = vld [vmem:[%s3181_s1 + $0x178] sm:$0xff] (!%p191_p9)  ;;  %s215_s15 = sand.u32 (!%p191_p9), 1, %s2175_s19   ;;  %s1631_s17 = sshll.u32 (!%p191_p9), %s2242_s22, 8 }
  0x12   : > { %1741 = vmatprep.subr.bf16.mxu0 (!%p191_p9), %v1740_v9  ;;  %v1746_v20 = vpack.c.bf16 (!%p191_p9), %v1519_v17, %v1517_v16  ;;  %v1748_v21 = vpack.c.bf16 (!%p191_p9), %v1524_v19, %v1522_v18  ;;  %v1521_v22 = vld [vmem:[%s3181_s1 + $0x160] sm:$0xff] (!%p191_p9)  ;;  %v1523_v23 = vld [vmem:[%s3181_s1 + $0x170] sm:$0xff] (!%p191_p9)  ;;  %v1526_v24 = vld [vmem:[%s3181_s1 + $0x188] sm:$0xff] (!%p191_p9)  ;;  %s1506_s16 = sshll.u32 (!%p191_p9), %s215_s15, 4  ;;  %s3135_s8 = scalar_lea.hbm (!%p191_p9), %s3185_s5, %s1631_s17 }
  0x13   : > { %v1528_v25 = vld [vmem:[%s3181_s1 + $0x198] sm:$0xff] (!%p191_p9)  ;;  %v1750_v27 = vpack.c.bf16 (!%p191_p9), %v1523_v23, %v1521_v22  ;;  %v1525_v29 = vld [vmem:[%s3181_s1 + $0x180] sm:$0xff] (!%p191_p9)  ;;  %v1527_v30 = vld [vmem:[%s3181_s1 + $0x190] sm:$0xff] (!%p191_p9)  ;;  %s217_s23 = scalar_lea.vmem (!%p191_p9), [#allocation3], %s1506_s16 }
  0x14   : > { %v1752_v28 = vpack.c.bf16 (!%p191_p9), %v1528_v25, %v1526_v24  ;;  %v1530_v31 = vld [vmem:[%s3181_s1 + $0x1a8] sm:$0xff] (!%p191_p9)  ;;  %v1532_v32 = vld [vmem:[%s3181_s1 + $0x1b8] sm:$0xff] (!%p191_p9)  ;;  %v1754_v33 = vpack.c.bf16 (!%p191_p9), %v1527_v30, %v1525_v29  ;;  %v1529_v35 = vld [vmem:[%s3181_s1 + $0x1a0] sm:$0xff] (!%p191_p9)  ;;  %s1440_s25 = sshll.u32 (!%p191_p9), %s217_s23, 4  ;;  %s3137_s25 = int_to_ptr.vmem [resolvable:$true] %s1440_s25 }
  0x15   : > { %s219_s7 = scalar_select %p218_p10, %s2242_s22, 1  ;;  %1743 = vmatpush1.bf16.msra.mxu0 %v1742_v14  ;;  %v1756_v34 = vpack.c.bf16 %v1532_v32, %v1530_v31  ;;  %v1531_v36 = vld [vmem:[%s3181_s1 + $0x1b0] sm:$0xff]  ;;  %v1534_v37 = vld [vmem:[%s3181_s1 + $0x1c8] sm:$0xff]  ;;  %v1536_v38 = vld [vmem:[%s3181_s1 + $0x1d8] sm:$0xff] }
  0x16   : > { %1745 = vmatprep.subr.bf16.mxu0 %v1744_v15  ;;  %v1758_v39 = vpack.c.bf16 %v1531_v36, %v1529_v35  ;;  %v1760_v41 = vpack.c.bf16 %v1536_v38, %v1534_v37  ;;  %v1533_v42 = vld [vmem:[%s3181_s1 + $0x1c0] sm:$0xff]  ;;  %v1535_v43 = vld [vmem:[%s3181_s1 + $0x1d0] sm:$0xff]  ;;  %v1538_v44 = vld [vmem:[%s3181_s1 + $0x1e8] sm:$0xff]  ;;  %s3139_s22 = scalar_lea.sflag [#allocation4], %s215_s15 }
  0x17   : > { %s1630_s14 = sshll.u32 %s219_s7, 4  ;;  %v1540_v45 = vld [vmem:[%s3181_s1 + $0x1f8] sm:$0xff]  ;;  %v1762_v46 = vpack.c.bf16 %v1535_v43, %v1533_v42  ;;  %v1537_v48 = vld [vmem:[%s3181_s1 + $0x1e0] sm:$0xff]  ;;  %v1539_v49 = vld [vmem:[%s3181_s1 + $0x1f0] sm:$0xff]  ;;  %s2188_s7 = smov [#allocation3]  }
  0x18   : > { %s222_s30 = scalar_lea.vmem %s3180_s0, %s1630_s14  ;;  %v1764_v47 = vpack.c.bf16 %v1540_v45, %v1538_v44  ;;  %v234_v50 = vld [vmem:[%s3181_s1 + $0x8] sm:$0xff]  ;;  %v236_v51 = vld [vmem:[%s3181_s1 + $0x18] sm:$0xff]  ;;  %v1766_v52 = vpack.c.bf16 %v1539_v49, %v1537_v48  ;;  %v233_v54 = vld [vmem:[%s3181_s1] sm:$0xff]  ;;  %s2125_s9 = sshll.u32 %s2188_s7, 4  ;;  %s2126_s9 = int_to_ptr.vmem [resolvable:$false] %s2125_s9 }
  0x19   : > { %v2334_v26 = vld [vmem:[%s222_s30] sm:$0xff]  ;;  %1747 = vmatpush1.bf16.msra.mxu0 %v1746_v20  ;;  %v2361_v40 = vld [vmem:[%s222_s30 + $0x8] sm:$0xff]  ;;  %v1768_v53 = vpack.c.bf16 %v236_v51, %v234_v50  ;;  %v235_v55 = vld [vmem:[%s3181_s1 + $0x10] sm:$0xff]  ;;  %s2121_s30 = scalar_lea.vmem %s3137_s25, 256  ;;  %s2127_s10 = scalar_lea.vmem %s2126_s9, 512 }
  0x1a   : > { %228 = vst [vmem:[#allocation2 + $0x2] sm:$0xff] %v2334_v26  ;;  %1749 = vmatprep.subr.bf16.mxu0 %v1748_v21  ;;  %229 = vst [vmem:[#allocation2 + $0xa] sm:$0xff] %v2361_v40  ;;  %v238_v56 = vld [vmem:[%s3181_s1 + $0x28] sm:$0xff]  ;;  %v240_v57 = vld [vmem:[%s3181_s1 + $0x38] sm:$0xff]  ;;  %v1770_v59 = vpack.c.bf16 %v235_v55, %v233_v54  ;;  %p2122_p11 = scmp.ne.s32.totalorder %s3137_s25, %s2121_s30  ;;  %p2128_p0 = scmp.lt.s32.totalorder %s3137_s25, %s2126_s9 }
  0x1b   : > { %v1772_v60 = vpack.c.bf16 %v240_v57, %v238_v56  ;;  %v237_v61 = vld [vmem:[%s3181_s1 + $0x20] sm:$0xff]  ;;  %v239_v62 = vld [vmem:[%s3181_s1 + $0x30] sm:$0xff]  ;;  %v242_v63 = vld [vmem:[%s3181_s1 + $0x48] sm:$0xff]  ;;  %p2129_p1 = scmp.lt.s32.totalorder %s2127_s10, %s2121_s30 }
  0x1c   : > { %v244_v0 = vld [vmem:[%s3181_s1 + $0x58] sm:$0xff]  ;;  %v241_v2 = vld [vmem:[%s3181_s1 + $0x40] sm:$0xff]  ;;  %v243_v3 = vld [vmem:[%s3181_s1 + $0x50] sm:$0xff]  ;;  %v1774_v8 = vpack.c.bf16 %v239_v62, %v237_v61  ;;  %p2123_p12 = pnand %p2122_p11, %p2259_p5 }
  0x1d   : > { %1751 = vmatpush1.bf16.msra.mxu0 %v1750_v27  ;;  %v593_v4 = vld [vmem:[%s3183_s3 + $0x8] sm:$0xff]  ;;  %v595_v5 = vld [vmem:[%s3183_s3 + $0x18] sm:$0xff]  ;;  %v592_v6 = vld [vmem:[%s3183_s3] sm:$0xff]  ;;  %v1776_v13 = vpack.c.bf16 %v244_v0, %v242_v63  ;;  %v1778_v23 = vpack.c.bf16 %v243_v3, %v241_v2  ;;  %p2130_p2 = por %p2129_p1, %p2128_p0 }
  0x1e   : > { %1753 = vmatprep.subr.bf16.mxu0 %v1752_v28  ;;  %v2428_v9 = vpack.c.bf16 %v595_v5, %v593_v4  ;;  %v594_v10 = vld [vmem:[%s3183_s3 + $0x10] sm:$0xff]  ;;  %v597_v11 = vld [vmem:[%s3183_s3 + $0x28] sm:$0xff]  ;;  %v599_v12 = vld [vmem:[%s3183_s3 + $0x38] sm:$0xff]  ;;  %p2124_p13 = pneg %p2123_p12 }
  0x1f   : > { %v246_v14 = vld [vmem:[%s3181_s1 + $0x68] sm:$0xff]  ;;  %v2442_v15 = vpack.c.bf16 %v594_v10, %v592_v6  ;;  %v2444_v16 = vpack.c.bf16 %v599_v12, %v597_v11  ;;  %v596_v17 = vld [vmem:[%s3183_s3 + $0x20] sm:$0xff]  ;;  %v598_v18 = vld [vmem:[%s3183_s3 + $0x30] sm:$0xff] }
  0x20   : > { %v248_v19 = vld [vmem:[%s3181_s1 + $0x78] sm:$0xff]  ;;  %1833 = vmatprep.subr.bf16.mxu1 %v2428_v9  ;;  %v601_v20 = vld [vmem:[%s3183_s3 + $0x48] sm:$0xff]  ;;  %v2463_v22 = vpack.c.bf16 %v598_v18, %v596_v17  ;;  %v600_v25 = vld [vmem:[%s3183_s3 + $0x40] sm:$0xff]  ;;  %p2131_p3 = pnand %p2130_p2, %p2124_p13 }
  0x21   : > { %1755 = vmatpush1.bf16.msra.mxu0 %v1754_v33  ;;  %v265_v58 = vld [vmem:[#allocation2 + $0x1] sm:$0xff]  ;;  %v266_v1 = vld [vmem:[#allocation2 + $0x9] sm:$0xff]  ;;  %v603_v21 = vld [vmem:[%s3183_s3 + $0x58] sm:$0xff]  ;;  %1835 = vmatpush1.bf16.msra.mxu1 %v2442_v15  ;;  %v1780_v28 = vpack.c.bf16 %v248_v19, %v246_v14 }
  0x22   : > { %1757 = vmatprep.subr.bf16.mxu0 %v1756_v34  ;;  %v267_v24 = vld [vmem:[#allocation2 + $0x11] sm:$0x3]  ;;  %v245_v29 = vld [vmem:[%s3181_s1 + $0x60] sm:$0xff]  ;;  %1837 = vmatprep.subr.bf16.mxu1 %v2444_v16  ;;  %v2479_v31 = vpack.c.bf16 %v603_v21, %v601_v20  ;;  %v250_v32 = vld [vmem:[%s3181_s1 + $0x88] sm:$0xff] }
  0x23   : > { %v602_v27 = vld [vmem:[%s3183_s3 + $0x50] sm:$0xff]  ;;  %v252_v33 = vld [vmem:[%s3181_s1 + $0x98] sm:$0xff]  ;;  %v249_v37 = vld [vmem:[%s3181_s1 + $0x80] sm:$0xff] }
  0x24   : > { %v247_v30 = vld [vmem:[%s3181_s1 + $0x70] sm:$0xff]  ;;  %v2488_v34 = vpack.c.bf16 %v602_v27, %v600_v25  ;;  %v1784_v36 = vpack.c.bf16 %v252_v33, %v250_v32  ;;  %v253_v44 = vld [vmem:[%s3181_s1 + $0xa0] sm:$0xff]  ;;  %v1546_v0 = vld [vmem:[%s3181_s1 + $0x228] sm:$0xff] }
  0x25   : > { %1759 = vmatpush1.bf16.msra.mxu0 %v1758_v39  ;;  %1839 = vmatpush1.bf16.msra.mxu1 %v2463_v22  ;;  %v1782_v35 = vpack.c.bf16 %v247_v30, %v245_v29  ;;  %v251_v38 = vld [vmem:[%s3181_s1 + $0x90] sm:$0xff]  ;;  %v254_v39 = vld [vmem:[%s3181_s1 + $0xa8] sm:$0xff]  ;;  %v257_v50 = vld [vmem:[%s3181_s1 + $0xc0] sm:$0xff] }
  0x26   : > { %1761 = vmatprep.subr.bf16.mxu0 %v1760_v41  ;;  %1841 = vmatprep.subr.bf16.mxu1 %v2479_v31  ;;  %v256_v41 = vld [vmem:[%s3181_s1 + $0xb8] sm:$0xff]  ;;  %v1786_v42 = vpack.c.bf16 %v251_v38, %v249_v37  ;;  %v255_v45 = vld [vmem:[%s3181_s1 + $0xb0] sm:$0xff]  ;;  %v261_v56 = vld [vmem:[%s3181_s1 + $0xe0] sm:$0xff] }
  0x27   : > { %v1788_v43 = vpack.c.bf16 %v256_v41, %v254_v39  ;;  %v1790_v48 = vpack.c.bf16 %v255_v45, %v253_v44  ;;  %v259_v51 = vld [vmem:[%s3181_s1 + $0xd0] sm:$0xff]  ;;  %v1541_v62 = vld [vmem:[%s3181_s1 + $0x200] sm:$0xff]  ;;  %v1552_v10 = vld [vmem:[%s3181_s1 + $0x258] sm:$0xff] }
  0x28   : > { %v1794_v54 = vpack.c.bf16 %v259_v51, %v257_v50  ;;  %v263_v57 = vld [vmem:[%s3181_s1 + $0xf0] sm:$0xff]  ;;  %v230_v2 = vld [vmem:[#allocation2] sm:$0xff]  ;;  %v231_v12 = vld [vmem:[#allocation2 + $0x8] sm:$0xff] }
  0x29   : > { %1763 = vmatpush1.bf16.msra.mxu0 %v1762_v46  ;;  %1843 = vmatpush1.bf16.msra.mxu1 %v2488_v34  ;;  %v258_v46 = vld [vmem:[%s3181_s1 + $0xc8] sm:$0xff]  ;;  %v1543_v63 = vld [vmem:[%s3181_s1 + $0x210] sm:$0xff]  ;;  %v1545_v5 = vld [vmem:[%s3181_s1 + $0x220] sm:$0xff] }
  0x2a   : > { %1765 = vmatprep.subr.bf16.mxu0 %v1764_v47  ;;  %v260_v47 = vld [vmem:[%s3181_s1 + $0xd8] sm:$0xff]  ;;  %v1802_v3 = vpack.c.bf16 %v1543_v63, %v1541_v62  ;;  %v1547_v6 = vld [vmem:[%s3181_s1 + $0x230] sm:$0xff]  ;;  %v1549_v14 = vld [vmem:[%s3181_s1 + $0x240] sm:$0xff] }
  0x2b   : > { %v1792_v49 = vpack.c.bf16 %v260_v47, %v258_v46  ;;  %v1806_v11 = vpack.c.bf16 %v1547_v6, %v1545_v5  ;;  %v1551_v17 = vld [vmem:[%s3181_s1 + $0x250] sm:$0xff]  ;;  %v1554_v18 = vld [vmem:[%s3181_s1 + $0x268] sm:$0xff]  ;;  %v1556_v19 = vld [vmem:[%s3181_s1 + $0x278] sm:$0xff] }
  0x2c   : > { %v1810_v20 = vpack.c.bf16 %v1551_v17, %v1549_v14  ;;  %v232_v21 = vld [vmem:[#allocation2 + $0x10] sm:$0x3]  ;;  %v1558_v27 = vld [vmem:[%s3181_s1 + $0x288] sm:$0xff]  ;;  %v1557_v32 = vld [vmem:[%s3181_s1 + $0x280] sm:$0xff] }
  0x2d   : > { %1767 = vmatpush1.bf16.msra.mxu0 %v1766_v52  ;;  %v262_v52 = vld [vmem:[%s3181_s1 + $0xe8] sm:$0xff]  ;;  %v1555_v25 = vld [vmem:[%s3181_s1 + $0x270] sm:$0xff]  ;;  %v1561_v39 = vld [vmem:[%s3181_s1 + $0x2a0] sm:$0xff] }
  0x2e   : > { %1769 = vmatprep.subr.bf16.mxu0 %v1768_v53  ;;  %v264_v53 = vld [vmem:[%s3181_s1 + $0xf8] sm:$0xff]  ;;  %v1559_v33 = vld [vmem:[%s3181_s1 + $0x290] sm:$0xff]  ;;  %v1565_v46 = vld [vmem:[%s3181_s1 + $0x2c0] sm:$0xff] }
  0x2f   : > { %v1796_v55 = vpack.c.bf16 %v264_v53, %v262_v52  ;;  %v1818_v37 = vpack.c.bf16 %v1559_v33, %v1557_v32  ;;  %v1563_v41 = vld [vmem:[%s3181_s1 + $0x2b0] sm:$0xff]  ;;  %v1569_v52 = vld [vmem:[%s3181_s1 + $0x2e0] sm:$0xff] }
  0x30   : > { %366 = vmatmul.mubr.f32.vlgmr.msra.gmra.mrb[0].mxu0 %v265_v58  ;;  %v1542_v58 = vld [vmem:[%s3181_s1 + $0x208] sm:$0xff]  ;;  %v1822_v44 = vpack.c.bf16 %v1563_v41, %v1561_v39  ;;  %v1567_v47 = vld [vmem:[%s3181_s1 + $0x2d0] sm:$0xff]  ;;  %v608_v63 = vld [vmem:[%s3183_s3 + $0x80] sm:$0xff] }
  0x31   : > { %1771 = vmatpush1.bf16.msra.mxu0 %v1770_v59  ;;  %371 = vmatprep.mubr.f32.mxu0 %v2185_v7  ;;  %v1544_v59 = vld [vmem:[%s3181_s1 + $0x218] sm:$0xff]  ;;  %v1826_v50 = vpack.c.bf16 %v1567_v47, %v1565_v46  ;;  %v1571_v53 = vld [vmem:[%s3181_s1 + $0x2f0] sm:$0xff]  ;;  %v612_v5 = vld [vmem:[%s3183_s3 + $0xa0] sm:$0xff] }
  0x32   : > { %1773 = vmatprep.subr.bf16.mxu0 %v1772_v60  ;;  %v1798_v60 = vpack.c.bf16 %v263_v57, %v261_v56  ;;  %v1800_v61 = vpack.c.bf16 %v1544_v59, %v1542_v58  ;;  %v605_v56 = vld [vmem:[%s3183_s3 + $0x68] sm:$0xff]  ;;  %v607_v57 = vld [vmem:[%s3183_s3 + $0x78] sm:$0xff]  ;;  %v614_v6 = vld [vmem:[%s3183_s3 + $0xb0] sm:$0xff] }
  0x33   : > { %v2644_v58 = vpack.c.bf16 %v607_v57, %v605_v56  ;;  %v618_v14 = vld [vmem:[%s3183_s3 + $0xd0] sm:$0xff] }
  0x34   : > { %372 = vmatmul.mubr.f32.gmra.mrb[2].mxu0 %v266_v1  ;;  %v1548_v1 = vld [vmem:[%s3181_s1 + $0x238] sm:$0xff] }
  0x35   : > { %1775 = vmatpush1.bf16.msra.mxu0 %v1774_v8  ;;  %377 = vmatprep.mubr.f32.mxu0 %v2185_v7  ;;  %v1804_v4 = vpack.c.bf16 %v1548_v1, %v1546_v0  ;;  %v1550_v8 = vld [vmem:[%s3181_s1 + $0x248] sm:$0xff]  ;;  %v610_v0 = vld [vmem:[%s3183_s3 + $0x90] sm:$0xff] }
  0x36   : > { %1777 = vmatprep.subr.bf16.mxu0 %v1776_v13  ;;  %v1808_v13 = vpack.c.bf16 %v1552_v10, %v1550_v8  ;;  %1845 = vmatprep.subr.bf16.mxu1 %v2644_v58  ;;  %v2670_v1 = vpack.c.bf16 %v610_v0, %v608_v63  ;;  %v2688_v8 = vpack.c.bf16 %v614_v6, %v612_v5  ;;  %v617_v10 = vld [vmem:[%s3183_s3 + $0xc8] sm:$0xff] }
  0x38   : > { %378 = vmatmul.mubr.f32.gmra.mrb[4].mxu0 %v267_v24  ;;  %v1553_v24 = vld [vmem:[%s3181_s1 + $0x260] sm:$0xff] }
  0x39   : > { %1779 = vmatpush1.bf16.msra.mxu0 %v1778_v23  ;;  %448 = vmatprep.mubr.f32.mxu0 %v2185_v7  ;;  %v1812_v23 = vpack.c.bf16 %v1556_v19, %v1554_v18  ;;  %v1814_v29 = vpack.c.bf16 %v1555_v25, %v1553_v24  ;;  %v621_v18 = vld [vmem:[%s3183_s3 + $0xe8] sm:$0xff]  ;;  %v623_v19 = vld [vmem:[%s3183_s3 + $0xf8] sm:$0xff] }
  0x3a   : > { %1781 = vmatprep.subr.bf16.mxu0 %v1780_v28  ;;  %v1560_v28 = vld [vmem:[%s3181_s1 + $0x298] sm:$0xff]  ;;  %v625_v25 = vld [vmem:[%s3183_s3 + $0x108] sm:$0xff] }
  0x3b   : > { %v1816_v30 = vpack.c.bf16 %v1560_v28, %v1558_v27  ;;  %v627_v27 = vld [vmem:[%s3183_s3 + $0x118] sm:$0xff] }
  0x3c   : > { %v2734_v28 = vpack.c.bf16 %v627_v27, %v625_v25 }
  0x3d   : > { %1783 = vmatpush1.bf16.msra.mxu0 %v1782_v35  ;;  %v1562_v35 = vld [vmem:[%s3181_s1 + $0x2a8] sm:$0xff] }
  0x3e   : > { %1785 = vmatprep.subr.bf16.mxu0 %v1784_v36  ;;  %v1564_v36 = vld [vmem:[%s3181_s1 + $0x2b8] sm:$0xff] }
  0x3f   : > { %v1820_v38 = vpack.c.bf16 %v1564_v36, %v1562_v35 }
  0x41   : > { %1787 = vmatpush1.bf16.msra.mxu0 %v1786_v42  ;;  %v1566_v42 = vld [vmem:[%s3181_s1 + $0x2c8] sm:$0xff] }
  0x42   : > { %1789 = vmatprep.subr.bf16.mxu0 %v1788_v43  ;;  %v1568_v43 = vld [vmem:[%s3181_s1 + $0x2d8] sm:$0xff] }
  0x43   : > { %v1824_v45 = vpack.c.bf16 %v1568_v43, %v1566_v42 }
  0x45   : > { %1791 = vmatpush1.bf16.msra.mxu0 %v1790_v48  ;;  %v1570_v48 = vld [vmem:[%s3181_s1 + $0x2e8] sm:$0xff] }
  0x46   : > { %1793 = vmatprep.subr.bf16.mxu0 %v1792_v49  ;;  %v1572_v49 = vld [vmem:[%s3181_s1 + $0x2f8] sm:$0xff] }
  0x47   : > { %v1828_v51 = vpack.c.bf16 %v1572_v49, %v1570_v48 }
  0x49   : > { %1795 = vmatpush1.bf16.msra.mxu0 %v1794_v54  ;;  %v1830_v54 = vpack.c.bf16 %v1571_v53, %v1569_v52 }
  0x4a   : > { %1797 = vmatprep.subr.bf16.mxu0 %v1796_v55  ;;  %v469_v55 = vld [vmem:[#allocation2 + $0x12] sm:$0x3] }
  0x4d   : > { %1799 = vmatpush1.bf16.msra.mxu0 %v1798_v60  ;;  %v609_v60 = vld [vmem:[%s3183_s3 + $0x88] sm:$0xff] }
  0x4e   : > { %1801 = vmatprep.subr.bf16.mxu0 %v1800_v61  ;;  %v611_v61 = vld [vmem:[%s3183_s3 + $0x98] sm:$0xff] }
  0x4f   : > { %v2662_v62 = vpack.c.bf16 %v611_v61, %v609_v60 }
  0x50   : > { %449 = vmatmul.mubr.f32.vlgmr.msra.gmra.mrb[0].mxu0 %v230_v2  ;;  %v613_v2 = vld [vmem:[%s3183_s3 + $0xa8] sm:$0xff] }
  0x51   : > { %1803 = vmatpush1.bf16.msra.mxu0 %v1802_v3  ;;  %454 = vmatprep.mubr.f32.mxu0 %v2185_v7  ;;  %v615_v3 = vld [vmem:[%s3183_s3 + $0xb8] sm:$0xff] }
  0x52   : > { %1805 = vmatprep.subr.bf16.mxu0 %v1804_v4  ;;  %v2680_v4 = vpack.c.bf16 %v615_v3, %v613_v2 }
  0x54   : > { %455 = vmatmul.mubr.f32.gmra.mrb[2].mxu0 %v231_v12 }
  0x55   : > { %1807 = vmatpush1.bf16.msra.mxu0 %v1806_v11  ;;  %460 = vmatprep.mubr.f32.mxu0 %v2185_v7  ;;  %v619_v11 = vld [vmem:[%s3183_s3 + $0xd8] sm:$0xff] }
  0x56   : > { %1809 = vmatprep.subr.bf16.mxu0 %v1808_v13  ;;  %v2698_v12 = vpack.c.bf16 %v619_v11, %v617_v10  ;;  %v616_v13 = vld [vmem:[%s3183_s3 + $0xc0] sm:$0xff] }
  0x57   : > { %v2706_v17 = vpack.c.bf16 %v618_v14, %v616_v13 }
  0x58   : > { %461 = vmatmul.mubr.f32.gmra.mrb[4].mxu0 %v232_v21  ;;  %v620_v21 = vld [vmem:[%s3183_s3 + $0xe0] sm:$0xff] }
  0x59   : > { %1811 = vmatpush1.bf16.msra.mxu0 %v1810_v20  ;;  %567 = vmatprep.mubr.f32.mxu0 %v2185_v7  ;;  %v2716_v20 = vpack.c.bf16 %v623_v19, %v621_v18 }
  0x5a   : > { %1813 = vmatprep.subr.bf16.mxu0 %v1812_v23  ;;  %v622_v23 = vld [vmem:[%s3183_s3 + $0xf0] sm:$0xff] }
  0x5b   : > { %v2724_v24 = vpack.c.bf16 %v622_v23, %v620_v21 }
  0x5d   : > { %1815 = vmatpush1.bf16.msra.mxu0 %v1814_v29  ;;  %v624_v29 = vld [vmem:[%s3183_s3 + $0x100] sm:$0xff] }
  0x5e   : > { %1817 = vmatprep.subr.bf16.mxu0 %v1816_v30  ;;  %v626_v30 = vld [vmem:[%s3183_s3 + $0x110] sm:$0xff] }
  0x5f   : > { %v2742_v32 = vpack.c.bf16 %v626_v30, %v624_v29 }
  0x61   : > { %1819 = vmatpush1.bf16.msra.mxu0 %v1818_v37 }
  0x62   : > { %1821 = vmatprep.subr.bf16.mxu0 %v1820_v38 }
  0x65   : > { %1823 = vmatpush1.bf16.msra.mxu0 %v1822_v44 }
  0x66   : > { %1825 = vmatprep.subr.bf16.mxu0 %v1824_v45 }
  0x69   : > { %1827 = vmatpush1.bf16.msra.mxu0 %v1826_v50 }
  0x6a   : > { %1829 = vmatprep.subr.bf16.mxu0 %v1828_v51 }
  0x6d   : > { %1831 = vmatpush1.bf16.msra.mxu0 %v1830_v54 }
  0x70   : > { %568 = vmatmul.mubr.f32.vlgmr.msra.gmra.mrb[0].mxu0 %v2334_v26  ;;  %v604_v26 = vld [vmem:[%s3183_s3 + $0x60] sm:$0xff] }
  0x71   : > { %573 = vmatprep.mubr.f32.mxu0 %v2185_v7 }
  0x74   : > { %574 = vmatmul.mubr.f32.gmra.mrb[2].mxu0 %v2361_v40  ;;  %v606_v40 = vld [vmem:[%s3183_s3 + $0x70] sm:$0xff] }
  0x75   : > { %579 = vmatprep.mubr.f32.mxu0 %v2185_v7  ;;  %v2652_v59 = vpack.c.bf16 %v606_v40, %v604_v26 }
  0x77   : > { %1847 = vmatpush1.bf16.msra.mxu1 %v2652_v59 }
  0x78   : > { %580 = vmatmul.mubr.f32.gmra.mrb[4].mxu0 %v469_v55  ;;  %1849 = vmatprep.subr.bf16.mxu1 %v2662_v62 }
  0x79   : > { %1698 = vmatprep.mubr.msk.f32.mxu0 %vm2187_vm11, %v2185_v7 }
  0x7b   : > { %1851 = vmatpush1.bf16.msra.mxu1 %v2670_v1 }
  0x7c   : > { %1853 = vmatprep.subr.bf16.mxu1 %v2680_v4 }
  0x7f   : > { %1855 = vmatpush1.bf16.msra.mxu1 %v2688_v8 }
  0x80   : > { %1857 = vmatprep.subr.bf16.mxu1 %v2698_v12 }
  0x83   : > { %1859 = vmatpush1.bf16.msra.mxu1 %v2706_v17 }
  0x84   : > { %1861 = vmatprep.subr.bf16.mxu1 %v2716_v20 }
  0x87   : > { %1863 = vmatpush1.bf16.msra.mxu1 %v2724_v24 }
  0x88   : > { %1865 = vmatprep.subr.bf16.mxu1 %v2734_v28 }
  0x8b   : > { %1867 = vmatpush1.bf16.msra.mxu1 %v2742_v32 }
  0x8c   : > { %1869 = vmatprep.subr.bf16.mxu1 %v2428_v9 }
 0x143   : > { %v2747_v33 = vpop.f32.mrb[0].mxu0 }
 0x144   : > { %v2749_v35 = vpop.f32.mrb[1].mxu0  ;;  %v651_v38 = vmul.f32 %v2747_v33, %v2747_v33 }
 0x145   : > { %v652_v36 = vmul.f32 %v2749_v35, %v2749_v35  ;;  %v639_v42 = vsel %vm638_vm0, %v2749_v35, 0.0 }
 0x147   : > { %v2753_v37 = vpop.f32.mrb[2].mxu0  ;;  %v666_v47 = vsel %vm638_vm0, %v652_v36, 0.0 }
 0x148   : > { %v628_v39 = vadd.f32 %v2753_v37, %v2747_v33  ;;  %v653_v41 = vmul.f32 %v2753_v37, %v2753_v37  ;;  %v2761_v9 = vpop.f32.mrb[3].mxu0 }
 0x149   : > { %v640_v43 = vsel %vm638_vm0, %v2761_v9, 0.0  ;;  %v654_v44 = vmul.f32 %v2761_v9, %v2761_v9 }
 0x14a   : > { %v657_v45 = vadd.f32 %v653_v41, %v651_v38  ;;  %v641_v46 = vadd.f32 %v640_v43, %v639_v42  ;;  %v1590_v41 = vld [vmem:[%s3182_s2 + $0xd8] sm:$0xff]  ;;  %v1591_v43 = vld [vmem:[%s3182_s2 + $0xe0] sm:$0xff] }
 0x14b   : > { %v667_v48 = vsel %vm638_vm0, %v654_v44, 0.0  ;;  %v2771_v49 = vpop.f32.mrb[4].mxu0  ;;  %v1592_v44 = vld [vmem:[%s3182_s2 + $0xe8] sm:$0xff] }
 0x14c   : > { %v668_v50 = vadd.f32 %v667_v48, %v666_v47  ;;  %v630_v51 = vsel %vm629_vm1, %v2771_v49, 0.0  ;;  %v655_v52 = vmul.f32 %v2771_v49, %v2771_v49  ;;  %v2776_v53 = vpop.f32.mrb[5].mxu0  ;;  %v1594_v47 = vld [vmem:[%s3182_s2 + $0xf8] sm:$0xff] }
 0x14d   : > { %v631_v54 = vadd.f32 %v630_v51, %v628_v39  ;;  %v643_v55 = vsel %vm642_vm2, %v2776_v53, 0.0  ;;  %v656_v56 = vmul.f32 %v2776_v53, %v2776_v53  ;;  %v1589_v39 = vld [vmem:[%s3182_s2 + $0xd0] sm:$0xff]  ;;  %v1596_v51 = vld [vmem:[%s3182_s2 + $0x108] sm:$0xff] }
 0x14e   : > { %v658_v57 = vsel %vm629_vm1, %v655_v52, 0.0  ;;  %v644_v26 = vadd.f32 %v643_v55, %v641_v46  ;;  %v1917_v42 = vpack.c.bf16 %v1590_v41, %v1589_v39  ;;  %v1593_v46 = vld [vmem:[%s3182_s2 + $0xf0] sm:$0xff]  ;;  %v1598_v55 = vld [vmem:[%s3182_s2 + $0x118] sm:$0xff] }
 0x14f   : > { %v632_v40 = vrot.slane %v631_v54, 4  ;;  %v659_v60 = vadd.f32 %v658_v57, %v657_v45  ;;  %v669_v61 = vsel %vm642_vm2, %v656_v56, 0.0  ;;  %v1920_v45 = vpack.c.bf16 %v1592_v44, %v1591_v43 }
 0x150   : > { %v645_v63 = vrot.slane %v644_v26, 4  ;;  %v670_v0 = vadd.f32 %v669_v61, %v668_v50  ;;  %v1923_v48 = vpack.c.bf16 %v1594_v47, %v1593_v46  ;;  %v1595_v50 = vld [vmem:[%s3182_s2 + $0x100] sm:$0xff]  ;;  %v837_v57 = vlaneseq  ;;  %v896_v47 = vld [vmem:[%s3182_s2 + $0x8] sm:$0xff] }
 0x151   : > { %v633_v2 = vadd.f32 %v632_v40, %v631_v54  ;;  %v660_v36 = vrot.slane %v659_v60, 4  ;;  %v1926_v52 = vpack.c.bf16 %v1596_v51, %v1595_v50  ;;  %v1597_v54 = vld [vmem:[%s3182_s2 + $0x110] sm:$0xff]  ;;  %v895_v46 = vld [vmem:[%s3182_s2] sm:$0xff] }
 0x152   : > { %v671_v3 = vrot.slane %v670_v0, 4  ;;  %v646_v5 = vadd.f32 %v645_v63, %v644_v26  ;;  %v1929_v56 = vpack.c.bf16 %v1598_v55, %v1597_v54  ;;  %v838_v26 = vshrl.u32 %v837_v57, 7 }
 0x153   : > { %v634_v6 = vrot.slane %v633_v2, 2 }
 0x154   : > { %v672_v10 = vadd.f32 %v671_v3, %v670_v0  ;;  %v647_v11 = vrot.slane %v646_v5, 2  ;;  %v2865_v40 = vsub.s32 0, %v838_v26 }
 0x155   : > { %v635_v13 = vadd.f32 %v634_v6, %v633_v2 }
 0x156   : > { %v673_v14 = vrot.slane %v672_v10, 2  ;;  %v648_v18 = vadd.f32 %v647_v11, %v646_v5 }
 0x157   : > { %v636_v19 = vrot.slane %v635_v13, 1 }
 0x158   : > { %v649_v21 = vrot.slane %v648_v18, 1  ;;  %v674_v23 = vadd.f32 %v673_v14, %v672_v10 }
 0x159   : > { %v637_v29 = vadd.f32 %v636_v19, %v635_v13  ;;  %v1223_v19 = vld [vmem:[%s3184_s4 + $0x8] sm:$0xff] }
 0x15a   : > { %v650_v25 = vadd.f32 %v649_v21, %v648_v18  ;;  %v675_v27 = vrot.slane %v674_v23, 1  ;;  %v1222_v18 = vld [vmem:[%s3184_s4] sm:$0xff] }
 0x15c   : > { %1573 = vmatprep.mubr.msk.f32.mxu1 %vm638_vm0, %v650_v25  ;;  %v676_v30 = vadd.f32 %v675_v27, %v674_v23  ;;  %v1228_v25 = vld [vmem:[%s3184_s4 + $0x30] sm:$0xff]  ;;  %v1229_v27 = vld [vmem:[%s3184_s4 + $0x38] sm:$0xff] }
 0x15d   : > { %745 = vmatmul.mubr.f32.vlgmr.msra.gmra.mrb[0].mxu1 %v637_v29 }
 0x15e   : > { %1871 = vmatpush1.bf16.msra.mxu1 %v2442_v15  ;;  %1574 = vmatprep.mubr.msk.f32.mxu1 %vm638_vm0, %v676_v30  ;;  %v661_v15 = vadd.f32 %v660_v36, %v659_v60 }
 0x15f   : > { %1873 = vmatprep.subr.bf16.mxu1 %v2444_v16 }
 0x160   : > { %v662_v16 = vrot.slane %v661_v15, 2 }
 0x162   : > { %1875 = vmatpush1.bf16.msra.mxu1 %v2463_v22  ;;  %v663_v22 = vadd.f32 %v662_v16, %v661_v15 }
 0x163   : > { %1877 = vmatprep.subr.bf16.mxu1 %v2479_v31 }
 0x164   : > { %v664_v31 = vrot.slane %v663_v22, 1 }
 0x166   : > { %1879 = vmatpush1.bf16.msra.mxu1 %v2488_v34  ;;  %v665_v34 = vadd.f32 %v664_v31, %v663_v22  ;;  %v2910_v31 = vpack.c.bf16 %v1229_v27, %v1228_v25  ;;  %v897_v27 = vld [vmem:[%s3182_s2 + $0x10] sm:$0xff] }
 0x167   : > { %1881 = vmatprep.subr.bf16.mxu1 %v2644_v58  ;;  %v1581_v58 = vld [vmem:[%s3182_s2 + $0x90] sm:$0xff] }
 0x16a   : > { %1883 = vmatpush1.bf16.msra.mxu1 %v2652_v59  ;;  %v1582_v59 = vld [vmem:[%s3182_s2 + $0x98] sm:$0xff] }
 0x16b   : > { %1885 = vmatprep.subr.bf16.mxu1 %v2662_v62  ;;  %v1905_v62 = vpack.c.bf16 %v1582_v59, %v1581_v58 }
 0x16e   : > { %1887 = vmatpush1.bf16.msra.mxu1 %v2670_v1  ;;  %v2186_v1 = vmov 0.0|0.0  }
 0x16f   : > { %1889 = vmatprep.subr.bf16.mxu1 %v2680_v4  ;;  %1985 = vmatprep.subr.bf16.mxu0 %v2186_v1  ;;  %v1583_v4 = vld [vmem:[%s3182_s2 + $0xa0] sm:$0xff] }
 0x172   : > { %1891 = vmatpush1.bf16.msra.mxu1 %v2688_v8  ;;  %v1584_v8 = vld [vmem:[%s3182_s2 + $0xa8] sm:$0xff] }
 0x173   : > { %1893 = vmatprep.subr.bf16.mxu1 %v2698_v12  ;;  %v1908_v12 = vpack.c.bf16 %v1584_v8, %v1583_v4 }
 0x176   : > { %1895 = vmatpush1.bf16.msra.mxu1 %v2706_v17  ;;  %v1585_v17 = vld [vmem:[%s3182_s2 + $0xb0] sm:$0xff] }
 0x177   : > { %1897 = vmatprep.subr.bf16.mxu1 %v2716_v20  ;;  %v1586_v20 = vld [vmem:[%s3182_s2 + $0xb8] sm:$0xff] }
 0x17a   : > { %1899 = vmatpush1.bf16.msra.mxu1 %v2724_v24  ;;  %v1911_v24 = vpack.c.bf16 %v1586_v20, %v1585_v17 }
 0x17b   : > { %1901 = vmatprep.subr.bf16.mxu1 %v2734_v28  ;;  %v1587_v28 = vld [vmem:[%s3182_s2 + $0xc0] sm:$0xff] }
 0x17e   : > { %1903 = vmatpush1.bf16.msra.mxu1 %v2742_v32  ;;  %v1588_v32 = vld [vmem:[%s3182_s2 + $0xc8] sm:$0xff] }
 0x17f   : > { %1904 = vmatprep.subr.bf16.mxu1 %v2186_v1  ;;  %v1914_v38 = vpack.c.bf16 %v1588_v32, %v1587_v28 }
 0x181   : > { %819 = vmatmul.mubr.f32.vlgmr.msra.gmra.mrb[2].mxu1 %v665_v34 }
 0x182   : > { %1906 = vmatpush1.bf16.msra.mxu1 %v1905_v62 }
 0x183   : > { %1907 = vmatprep.subr.bf16.mxu1 %v2186_v1 }
 0x186   : > { %1909 = vmatpush1.bf16.msra.mxu1 %v1908_v12 }
 0x187   : > { %1910 = vmatprep.subr.bf16.mxu1 %v2186_v1 }
 0x18a   : > { %1912 = vmatpush1.bf16.msra.mxu1 %v1911_v24 }
 0x18b   : > { %1913 = vmatprep.subr.bf16.mxu1 %v2186_v1 }
 0x18e   : > { %1915 = vmatpush1.bf16.msra.mxu1 %v1914_v38 }
 0x18f   : > { %1916 = vmatprep.subr.bf16.mxu1 %v2186_v1 }
 0x192   : > { %1918 = vmatpush1.bf16.msra.mxu1 %v1917_v42 }
 0x193   : > { %1919 = vmatprep.subr.bf16.mxu1 %v2186_v1 }
 0x196   : > { %1921 = vmatpush1.bf16.msra.mxu1 %v1920_v45 }
 0x197   : > { %1922 = vmatprep.subr.bf16.mxu1 %v2186_v1 }
 0x19a   : > { %1924 = vmatpush1.bf16.msra.mxu1 %v1923_v48 }
 0x19b   : > { %1925 = vmatprep.subr.bf16.mxu1 %v2186_v1 }
 0x19e   : > { %1927 = vmatpush1.bf16.msra.mxu1 %v1926_v52  ;;  %v1932_v52 = vpack.c.bf16 %v896_v47, %v895_v46  ;;  %v908_v46 = vld [vmem:[%s3182_s2 + $0x68] sm:$0xff] }
 0x19f   : > { %1928 = vmatprep.subr.bf16.mxu1 %v2186_v1 }
 0x1a2   : > { %1930 = vmatpush1.bf16.msra.mxu1 %v1929_v56 }
 0x1a3   : > { %1931 = vmatprep.subr.bf16.mxu1 %v2186_v1 }
 0x230   : > { %v746_v60 = vpop.f32.mrb[0].mxu1 }
 0x231   : > { %v825_v61 = vmul.f32 0.0030864198, %v746_v60  ;;  %v748_v63 = vpop.f32.mrb[1].mxu1 }
 0x232   : > { %v826_v0 = vmul.f32 0.0030864198, %v748_v63 }
 0x233   : > { %v840_v2 = vrot.slane %v825_v61, %v2865_v40  ;;  %v829_v29 = vmul.f32 %v825_v61, %v825_v61 }
 0x234   : > { %v844_v3 = vrot.slane %v826_v0, %v2865_v40  ;;  %v830_v15 = vmul.f32 %v826_v0, %v826_v0 }
 0x235   : > { %v845_v5 = vsub.f32 %v2747_v33, %v840_v2  ;;  %v847_v6 = vsub.f32 %v2753_v37, %v840_v2  ;;  %v849_v10 = vsub.f32 %v2771_v49, %v840_v2  ;;  %v1224_v33 = vld [vmem:[%s3184_s4 + $0x10] sm:$0xff]  ;;  %v2884_v37 = vpack.c.bf16 %v1223_v19, %v1222_v18  ;;  %v1226_v49 = vld [vmem:[%s3184_s4 + $0x20] sm:$0xff] }
 0x236   : > { %v846_v11 = vsub.f32 %v2749_v35, %v844_v3  ;;  %v848_v13 = vsub.f32 %v2761_v9, %v844_v3  ;;  %v850_v14 = vsub.f32 %v2776_v53, %v844_v3  ;;  %v1225_v35 = vld [vmem:[%s3184_s4 + $0x18] sm:$0xff]  ;;  %v1227_v53 = vld [vmem:[%s3184_s4 + $0x28] sm:$0xff] }
 0x237   : > { %1987 = vmatpush3.bf16.msra.mxu0 %v2884_v37  ;;  %v2890_v9 = vpack.c.bf16 %v1225_v35, %v1224_v33  ;;  %v2900_v21 = vpack.c.bf16 %v1227_v53, %v1226_v49 }
 0x238   : > { %1988 = vmatprep.subr.bf16.mxu0 %v2186_v1 }
 0x23b   : > { %1990 = vmatpush3.bf16.msra.mxu0 %v2890_v9 }
 0x23c   : > { %1991 = vmatprep.subr.bf16.mxu0 %v2186_v1 }
 0x23f   : > { %1993 = vmatpush3.bf16.msra.mxu0 %v2900_v21 }
 0x240   : > { %1994 = vmatprep.subr.bf16.mxu0 %v2186_v1 }
 0x243   : > { %1996 = vmatpush3.bf16.msra.mxu0 %v2910_v31 }
 0x244   : > { %1997 = vmatprep.subr.bf16.mxu0 %v2186_v1 }
 0x254   : > { %v820_v23 = vpop.f32.mrb[2].mxu1 }
 0x255   : > { %v827_v30 = vmul.f32 0.0030864198, %v820_v23  ;;  %v822_v36 = vpop.f32.mrb[3].mxu1 }
 0x256   : > { %v828_v16 = vmul.f32 0.0030864198, %v822_v36 }
 0x257   : > { %v831_v22 = vsub.f32 %v827_v30, %v829_v29  ;;  %v898_v29 = vld [vmem:[%s3182_s2 + $0x18] sm:$0xff] }
 0x258   : > { %v832_v34 = vsub.f32 %v828_v16, %v830_v15 }
 0x259   : > { %v833_v58 = vadd.f32 1e-05, %v831_v22 }
 0x25a   : > { %v834_v59 = vadd.f32 1e-05, %v832_v34 }
 0x25b   : > { %2097 = vrsqrt.f32 %v833_v58 }
 0x25c   : > { %2099 = vrsqrt.f32 %v834_v59 }
 0x265   : > { %v2098_v62 = vpop.eup %2097 }
 0x266   : > { %v2100_v4 = vpop.eup %2099  ;;  %v854_v8 = vrot.slane %v2098_v62, %v2865_v40  ;;  %v1935_v62 = vpack.c.bf16 %v898_v29, %v897_v27  ;;  %v1619_v29 = vld [vmem:[%s3182_s2 + $0x1a0] sm:$0xff] }
 0x267   : > { %v858_v12 = vrot.slane %v2100_v4, %v2865_v40 }
 0x268   : > { %v859_v17 = vmul.f32 %v854_v8, %v845_v5  ;;  %v861_v20 = vmul.f32 %v854_v8, %v847_v6  ;;  %v863_v24 = vmul.f32 %v854_v8, %v849_v10  ;;  %v899_v8 = vld [vmem:[%s3182_s2 + $0x20] sm:$0xff] }
 0x269   : > { %v860_v28 = vmul.f32 %v858_v12, %v846_v11  ;;  %v862_v32 = vmul.f32 %v858_v12, %v848_v13  ;;  %v864_v38 = vmul.f32 %v858_v12, %v850_v14  ;;  %v900_v12 = vld [vmem:[%s3182_s2 + $0x28] sm:$0xff] }
 0x26a   : > { %v871_v39 = vmul.f32 1.442695, %v859_v17  ;;  %v875_v43 = vmul.f32 1.442695, %v861_v20  ;;  %v879_v45 = vmul.f32 1.442695, %v863_v24 }
 0x26b   : > { %v873_v41 = vmul.f32 1.442695, %v860_v28  ;;  %v877_v42 = vmul.f32 1.442695, %v862_v32  ;;  %v881_v44 = vmul.f32 1.442695, %v864_v38 }
 0x26c   : > { %2101 = vpow2.f32 %v871_v39  ;;  %vm866_vm5 = vcmp.gt.f32.partialorder %v860_v28, 0.0  ;;  %vm865_vm6 = vcmp.gt.f32.partialorder %v859_v17, 0.0  ;;  %vm867_vm7 = vcmp.gt.f32.partialorder %v861_v20, 0.0  ;;  %v904_v39 = vld [vmem:[%s3182_s2 + $0x48] sm:$0xff] }
 0x26d   : > { %2103 = vpow2.f32 %v873_v41  ;;  %vm868_vm8 = vcmp.gt.f32.partialorder %v862_v32, 0.0  ;;  %vm870_vm9 = vcmp.gt.f32.partialorder %v864_v38, 0.0  ;;  %vm869_vm10 = vcmp.gt.f32.partialorder %v863_v24, 0.0 }
 0x26e   : > { %2105 = vpow2.f32 %v877_v42  ;;  %v905_v42 = vld [vmem:[%s3182_s2 + $0x50] sm:$0xff] }
 0x26f   : > { %2107 = vpow2.f32 %v875_v43  ;;  %v906_v43 = vld [vmem:[%s3182_s2 + $0x58] sm:$0xff] }
 0x270   : > { %2109 = vpow2.f32 %v881_v44  ;;  %v1947_v44 = vpack.c.bf16 %v906_v43, %v905_v42 }
 0x271   : > { %2111 = vpow2.f32 %v879_v45  ;;  %v907_v45 = vld [vmem:[%s3182_s2 + $0x60] sm:$0xff] }
 0x272   : > { %v1950_v47 = vpack.c.bf16 %v908_v46, %v907_v45 }
 0x276   : > { %v2102_v48 = vpop.eup %2101 }
 0x277   : > { %v2104_v50 = vpop.eup %2103  ;;  %v1575_v51 = vadd.f32 -1.0, %v2102_v48  ;;  %v909_v48 = vld [vmem:[%s3182_s2 + $0x70] sm:$0xff] }
 0x278   : > { %v2106_v54 = vpop.eup %2105  ;;  %v1576_v55 = vadd.f32 -1.0, %v2104_v50  ;;  %v910_v50 = vld [vmem:[%s3182_s2 + $0x78] sm:$0xff] }
 0x279   : > { %v2108_v56 = vpop.eup %2107  ;;  %v1578_v57 = vadd.f32 -1.0, %v2106_v54  ;;  %v2923_v26 = vsel %vm865_vm6, %v859_v17, %v1575_v51  ;;  %v1953_v51 = vpack.c.bf16 %v910_v50, %v909_v48  ;;  %v912_v54 = vld [vmem:[%s3182_s2 + $0x88] sm:$0xff] }
 0x27a   : > { %v2110_v60 = vpop.eup %2109  ;;  %v890_v61 = vsel %vm866_vm5, %v860_v28, %v1576_v55  ;;  %v1577_v63 = vadd.f32 -1.0, %v2108_v56  ;;  %v939_v0 = vrot.slane %v2923_v26, 1  ;;  %v1129_v2 = vrot.slane %v2923_v26, 2  ;;  %v902_v28 = vld [vmem:[%s3182_s2 + $0x38] sm:$0xff]  ;;  %v1603_v56 = vld [vmem:[%s3182_s2 + $0x120] sm:$0xff] }
 0x27b   : > { %v2112_v3 = vpop.eup %2111  ;;  %v2927_v5 = vsel %vm868_vm8, %v862_v32, %v1578_v57  ;;  %v942_v6 = vrot.slane %v890_v61, 1  ;;  %v1580_v10 = vadd.f32 -1.0, %v2110_v60  ;;  %v1132_v11 = vrot.slane %v890_v61, 2  ;;  %v1604_v57 = vld [vmem:[%s3182_s2 + $0x128] sm:$0xff] }
 0x27c   : > { %v943_v13 = vrot.slane %v2927_v5, 1  ;;  %v2931_v14 = vsel %vm867_vm7, %v861_v20, %v1577_v63  ;;  %v1579_v18 = vadd.f32 -1.0, %v2112_v3  ;;  %v1133_v19 = vrot.slane %v2927_v5, 2  ;;  %v1606_v63 = vld [vmem:[%s3182_s2 + $0x138] sm:$0xff]  ;;  %v1608_v3 = vld [vmem:[%s3182_s2 + $0x148] sm:$0xff] }
 0x27d   : > { %v940_v33 = vrot.slane %v2931_v14, 1  ;;  %v894_v35 = vsel %vm870_vm9, %v864_v38, %v1580_v10  ;;  %v1130_v49 = vrot.slane %v2931_v14, 2  ;;  %v1938_v20 = vpack.c.bf16 %v900_v12, %v899_v8  ;;  %v903_v38 = vld [vmem:[%s3182_s2 + $0x40] sm:$0xff]  ;;  %v1236_v12 = vld [vmem:[%s3184_s4 + $0x70] sm:$0xff] }
 0x27e   : > { %v944_v53 = vsel %vm938_vm3, %v942_v6, %v943_v13  ;;  %v947_v23 = vrot.slane %v894_v35, 1  ;;  %v893_v25 = vsel %vm869_vm10, %v863_v24, %v1579_v18  ;;  %v2945_v30 = vsel %vm1128_vm4, %v1132_v11, %v1133_v19  ;;  %v901_v24 = vld [vmem:[%s3182_s2 + $0x30] sm:$0xff]  ;;  %v1610_v6 = vld [vmem:[%s3182_s2 + $0x158] sm:$0xff]  ;;  %v1611_v11 = vld [vmem:[%s3182_s2 + $0x160] sm:$0xff] }
 0x27f   : > { %1599 = vmatprep.mubr.msk.f32.mxu1 %vm638_vm0, %v944_v53  ;;  %v941_v36 = vsel %vm938_vm3, %v939_v0, %v940_v33  ;;  %v945_v15 = vrot.slane %v893_v25, 1  ;;  %v2950_v16 = vsel %vm1128_vm4, %v1129_v2, %v1130_v49  ;;  %v1137_v22 = vrot.slane %v894_v35, 2  ;;  %v1607_v2 = vld [vmem:[%s3182_s2 + $0x140] sm:$0xff]  ;;  %v1613_v18 = vld [vmem:[%s3182_s2 + $0x170] sm:$0xff] }
 0x280   : > { %1020 = vmatmul.mubr.f32.vlgmr.msra.gmra.mrb[4].mxu1 %v941_v36  ;;  %v948_v34 = vsel %vm938_vm3, %v943_v13, %v947_v23  ;;  %v1135_v58 = vrot.slane %v893_v25, 2  ;;  %v1941_v32 = vpack.c.bf16 %v902_v28, %v901_v24  ;;  %v1944_v41 = vpack.c.bf16 %v904_v39, %v903_v38  ;;  %v1612_v13 = vld [vmem:[%s3182_s2 + $0x168] sm:$0xff]  ;;  %v1615_v35 = vld [vmem:[%s3182_s2 + $0x180] sm:$0xff]  ;;  %v1617_v23 = vld [vmem:[%s3182_s2 + $0x190] sm:$0xff] }
 0x281   : > { %1933 = vmatpush1.bf16.msra.mxu1 %v1932_v52  ;;  %1600 = vmatprep.mubr.msk.f32.mxu1 %vm638_vm0, %v948_v34  ;;  %v946_v59 = vsel %vm938_vm3, %v940_v33, %v945_v15  ;;  %v2956_v4 = vsel %vm1128_vm4, %v1133_v19, %v1137_v22  ;;  %v911_v52 = vld [vmem:[%s3182_s2 + $0x80] sm:$0xff]  ;;  %v1959_v60 = vpack.c.bf16 %v1604_v57, %v1603_v56  ;;  %v1614_v19 = vld [vmem:[%s3182_s2 + $0x178] sm:$0xff]  ;;  %v1231_v22 = vld [vmem:[%s3184_s4 + $0x48] sm:$0xff] }
 0x282   : > { %1934 = vmatprep.subr.bf16.mxu1 %v2186_v1  ;;  %v2966_v17 = vsel %vm1128_vm4, %v1130_v49, %v1135_v58  ;;  %v1956_v55 = vpack.c.bf16 %v912_v54, %v911_v52  ;;  %v1974_v33 = vpack.c.bf16 %v1614_v19, %v1613_v18  ;;  %v1616_v49 = vld [vmem:[%s3182_s2 + $0x188] sm:$0xff]  ;;  %v1618_v25 = vld [vmem:[%s3182_s2 + $0x198] sm:$0xff]  ;;  %v1230_v15 = vld [vmem:[%s3184_s4 + $0x40] sm:$0xff] }
 0x283   : > { %v1977_v53 = vpack.c.bf16 %v1616_v49, %v1615_v35  ;;  %v1980_v27 = vpack.c.bf16 %v1618_v25, %v1617_v23  ;;  %v1998_v34 = vpack.c.bf16 %v1231_v22, %v1230_v15  ;;  %v1233_v58 = vld [vmem:[%s3184_s4 + $0x58] sm:$0xff] }
 0x284   : > { %1025 = vmatmul.mubr.f32.gmra.mrb[6].mxu1 %v946_v59 }
 0x285   : > { %1936 = vmatpush1.bf16.msra.mxu1 %v1935_v62  ;;  %1601 = vmatprep.mubr.msk.f32.mxu1 %vm638_vm0, %v890_v61  ;;  %v1605_v61 = vld [vmem:[%s3182_s2 + $0x130] sm:$0xff]  ;;  %v1234_v62 = vld [vmem:[%s3184_s4 + $0x60] sm:$0xff] }
 0x286   : > { %1937 = vmatprep.subr.bf16.mxu1 %v2186_v1  ;;  %v1962_v0 = vpack.c.bf16 %v1606_v63, %v1605_v61  ;;  %1999 = vmatpush3.bf16.msra.mxu0 %v1998_v34 }
 0x287   : > { %2000 = vmatprep.subr.bf16.mxu0 %v2186_v1 }
 0x289   : > { %1939 = vmatpush1.bf16.msra.mxu1 %v1938_v20 }
 0x28a   : > { %1940 = vmatprep.subr.bf16.mxu1 %v2186_v1 }
 0x28d   : > { %1942 = vmatpush1.bf16.msra.mxu1 %v1941_v32 }
 0x28e   : > { %1943 = vmatprep.subr.bf16.mxu1 %v2186_v1 }
 0x291   : > { %1945 = vmatpush1.bf16.msra.mxu1 %v1944_v41 }
 0x292   : > { %1946 = vmatprep.subr.bf16.mxu1 %v2186_v1 }
 0x295   : > { %1948 = vmatpush1.bf16.msra.mxu1 %v1947_v44 }
 0x296   : > { %1949 = vmatprep.subr.bf16.mxu1 %v2186_v1 }
 0x299   : > { %1951 = vmatpush1.bf16.msra.mxu1 %v1950_v47 }
 0x29a   : > { %1952 = vmatprep.subr.bf16.mxu1 %v2186_v1 }
 0x29d   : > { %1954 = vmatpush1.bf16.msra.mxu1 %v1953_v51 }
 0x29e   : > { %1955 = vmatprep.subr.bf16.mxu1 %v2186_v1 }
 0x2a1   : > { %1957 = vmatpush1.bf16.msra.mxu1 %v1956_v55 }
 0x2a2   : > { %1958 = vmatprep.subr.bf16.mxu1 %v2186_v1 }
 0x2a4   : > { %1099 = vmatmul.mubr.f32.vlgmr.msra.gmra.mrb[4].mxu1 %v2923_v26  ;;  %v1965_v26 = vpack.c.bf16 %v1608_v3, %v1607_v2 }
 0x2a5   : > { %1602 = vmatprep.mubr.msk.f32.mxu1 %vm638_vm0, %v2927_v5  ;;  %1960 = vmatpush1.bf16.msra.mxu1 %v1959_v60  ;;  %v1609_v5 = vld [vmem:[%s3182_s2 + $0x150] sm:$0xff] }
 0x2a6   : > { %1961 = vmatprep.subr.bf16.mxu1 %v2186_v1  ;;  %v1968_v10 = vpack.c.bf16 %v1610_v6, %v1609_v5 }
 0x2a8   : > { %1104 = vmatmul.mubr.f32.gmra.mrb[6].mxu1 %v2931_v14  ;;  %v1971_v14 = vpack.c.bf16 %v1612_v13, %v1611_v11  ;;  %v2119_v11 = vld [vmem:[#allocation2 + $0x2] sm:$0xff] }
 0x2a9   : > { %1963 = vmatpush1.bf16.msra.mxu1 %v1962_v0  ;;  %1621 = vmatprep.mubr.msk.f32.mxu1 %vm638_vm0, %v2945_v30  ;;  %v1620_v30 = vld [vmem:[%s3182_s2 + $0x1a8] sm:$0xff] }
 0x2aa   : > { %1964 = vmatprep.subr.bf16.mxu1 %v2186_v1  ;;  %v1983_v36 = vpack.c.bf16 %v1620_v30, %v1619_v29 }
 0x2ad   : > { %1966 = vmatpush1.bf16.msra.mxu1 %v1965_v26 }
 0x2ae   : > { %1967 = vmatprep.subr.bf16.mxu1 %v2186_v1 }
 0x2b1   : > { %1969 = vmatpush1.bf16.msra.mxu1 %v1968_v10 }
 0x2b2   : > { %1970 = vmatprep.subr.bf16.mxu1 %v2186_v1 }
 0x2b5   : > { %1972 = vmatpush1.bf16.msra.mxu1 %v1971_v14  ;;  %v2120_v14 = vld [vmem:[#allocation2 + $0xa] sm:$0xff] }
 0x2b6   : > { %1973 = vmatprep.subr.bf16.mxu1 %v2186_v1 }
 0x2b9   : > { %1975 = vmatpush1.bf16.msra.mxu1 %v1974_v33 }
 0x2ba   : > { %1976 = vmatprep.subr.bf16.mxu1 %v2186_v1 }
 0x2bd   : > { %1978 = vmatpush1.bf16.msra.mxu1 %v1977_v53 }
 0x2be   : > { %1979 = vmatprep.subr.bf16.mxu1 %v2186_v1 }
 0x2c1   : > { %1981 = vmatpush1.bf16.msra.mxu1 %v1980_v27 }
 0x2c2   : > { %1982 = vmatprep.subr.bf16.mxu1 %v2186_v1 }
 0x2c5   : > { %1984 = vmatpush1.bf16.msra.mxu1 %v1983_v36 }
 0x2c8   : > { %1210 = vmatmul.mubr.f32.vlgmr.msra.gmra.mrb[4].mxu1 %v2950_v16  ;;  %v1232_v16 = vld [vmem:[%s3184_s4 + $0x50] sm:$0xff] }
 0x2c9   : > { %1622 = vmatprep.mubr.msk.f32.mxu1 %vm638_vm0, %v2956_v4  ;;  %v2001_v59 = vpack.c.bf16 %v1233_v58, %v1232_v16  ;;  %v1235_v4 = vld [vmem:[%s3184_s4 + $0x68] sm:$0xff] }
 0x2ca   : > { %v2004_v8 = vpack.c.bf16 %v1235_v4, %v1234_v62 }
 0x2cb   : > { %2002 = vmatpush3.bf16.msra.mxu0 %v2001_v59 }
 0x2cc   : > { %1215 = vmatmul.mubr.f32.gmra.mrb[6].mxu1 %v2966_v17  ;;  %2003 = vmatprep.subr.bf16.mxu0 %v2186_v1  ;;  %v1237_v17 = vld [vmem:[%s3184_s4 + $0x78] sm:$0xff] }
 0x2cd   : > { %v2007_v20 = vpack.c.bf16 %v1237_v17, %v1236_v12 }
 0x2cf   : > { %2005 = vmatpush3.bf16.msra.mxu0 %v2004_v8 }
 0x2d0   : > { %2006 = vmatprep.subr.bf16.mxu0 %v2186_v1 }
 0x2d3   : > { %2008 = vmatpush3.bf16.msra.mxu0 %v2007_v20 }
 0x2d4   : > { %2009 = vmatprep.subr.bf16.mxu0 %v2186_v1 }
 0x39b   : > { %v1211_v24 = vpop.f32.mrb[4].mxu1 }
 0x39c   : > { %v1213_v28 = vpop.f32.mrb[5].mxu1  ;;  %v1245_v38 = vmul.f32 %v1211_v24, %v1211_v24 }
 0x39f   : > { %v1216_v32 = vpop.f32.mrb[6].mxu1 }
 0x3a0   : > { %v1238_v39 = vadd.f32 %v1216_v32, %v1211_v24  ;;  %v1246_v41 = vmul.f32 %v1216_v32, %v1216_v32  ;;  %v1218_v42 = vpop.f32.mrb[7].mxu1 }
 0x3a2   : > { %v1239_v43 = vrot.slane %v1238_v39, 4  ;;  %v1247_v44 = vadd.f32 %v1246_v41, %v1245_v38 }
 0x3a4   : > { %v1240_v45 = vadd.f32 %v1239_v43, %v1238_v39  ;;  %v1248_v51 = vrot.slane %v1247_v44, 4 }
 0x3a6   : > { %v1241_v46 = vrot.slane %v1240_v45, 2  ;;  %v1249_v52 = vadd.f32 %v1248_v51, %v1247_v44 }
 0x3a8   : > { %v1242_v47 = vadd.f32 %v1241_v46, %v1240_v45 }
 0x3aa   : > { %v1243_v48 = vrot.slane %v1242_v47, 1 }
 0x3ac   : > { %v1244_v50 = vadd.f32 %v1243_v48, %v1242_v47 }
 0x3ae   : > { %1699 = vmatmul.mubr.f32.vlgmr.msra.gmra.mrb[6].mxu0 %v1244_v50 }
 0x3af   : > { %2011 = vmatpush3.bf16.msra.mxu0 %v2884_v37  ;;  %1733 = vmatprep.mubr.msk.f32.mxu0 %vm2187_vm11, %v2185_v7  ;;  %v1250_v37 = vrot.slane %v1249_v52, 2 }
 0x3b0   : > { %2012 = vmatprep.subr.bf16.mxu0 %v2186_v1 }
 0x3b1   : > { %v1251_v7 = vadd.f32 %v1250_v37, %v1249_v52 }
 0x3b3   : > { %2014 = vmatpush3.bf16.msra.mxu0 %v2890_v9  ;;  %v1252_v9 = vrot.slane %v1251_v7, 1 }
 0x3b4   : > { %2015 = vmatprep.subr.bf16.mxu0 %v2186_v1 }
 0x3b7   : > { %2017 = vmatpush3.bf16.msra.mxu0 %v2900_v21  ;;  %v1253_v21 = vadd.f32 %v1252_v9, %v1251_v7 }
 0x3b8   : > { %2018 = vmatprep.subr.bf16.mxu0 %v2186_v1 }
 0x3bb   : > { %2020 = vmatpush3.bf16.msra.mxu0 %v2910_v31 }
 0x3bc   : > { %2021 = vmatprep.subr.bf16.mxu0 %v2186_v1 }
 0x3bf   : > { %2023 = vmatpush3.bf16.msra.mxu0 %v1998_v34 }
 0x3c0   : > { %2024 = vmatprep.subr.bf16.mxu0 %v2186_v1 }
 0x3c3   : > { %2026 = vmatpush3.bf16.msra.mxu0 %v2001_v59 }
 0x3c4   : > { %2027 = vmatprep.subr.bf16.mxu0 %v2186_v1 }
 0x3c7   : > { %2029 = vmatpush3.bf16.msra.mxu0 %v2004_v8 }
 0x3c8   : > { %2030 = vmatprep.subr.bf16.mxu0 %v2186_v1 }
 0x3cb   : > { %2032 = vmatpush3.bf16.msra.mxu0 %v2007_v20 }
 0x3ce   : > { %1734 = vmatmul.mubr.f32.vlgmr.msra.gmra.mrb[8].mxu0 %v1253_v21 }
 0x481   : > { %v1320_v54 = vpop.f32.mrb[6].mxu0 }
 0x482   : > { %v1394_v31 = vmul.f32 0.00390625, %v1320_v54  ;;  %v1700_v55 = vpop.f32.mrb[7].mxu0 }
 0x484   : > { %v1403_v56 = vrot.slane %v1394_v31, %v2865_v40  ;;  %v1396_v63 = vmul.f32 %v1394_v31, %v1394_v31 }
 0x486   : > { %v1404_v57 = vsub.f32 %v1211_v24, %v1403_v56  ;;  %v1405_v60 = vsub.f32 %v1216_v32, %v1403_v56 }
 0x4a1   : > { %v1390_v61 = vpop.f32.mrb[8].mxu0 }
 0x4a2   : > { %v1395_v0 = vmul.f32 0.00390625, %v1390_v61  ;;  %v1735_v2 = vpop.f32.mrb[9].mxu0 }
 0x4a4   : > { %v1397_v3 = vsub.f32 %v1395_v0, %v1396_v63 }
 0x4a6   : > { %v1398_v26 = vadd.f32 1e-05, %v1397_v3 }
 0x4a8   : > { %2113 = vrsqrt.f32 %v1398_v26 }
 0x4b2   : > { %v2114_v1 = vpop.eup %2113 }
 0x4b3   : > { %v1409_v5 = vrot.slane %v2114_v1, %v2865_v40 }
 0x4b5   : > { %v1410_v6 = vmul.f32 %v1409_v5, %v1404_v57  ;;  %v1411_v10 = vmul.f32 %v1409_v5, %v1405_v60 }
 0x4b7   : > { %v1412_v13 = vadd.f32 %v2119_v11, %v1410_v6  ;;  %v1413_v18 = vadd.f32 %v2120_v14, %v1411_v10 }
 0x4b9   : > { %v1416_v19 = vmul.f32 1.442695, %v1412_v13  ;;  %v1418_v33 = vmul.f32 1.442695, %v1413_v18  ;;  %vm1414_vm12 = vcmp.gt.f32.partialorder %v1412_v13, 0.0  ;;  %vm1415_vm13 = vcmp.gt.f32.partialorder %v1413_v18, 0.0 }
 0x4bb   : > { %2115 = vpow2.f32 %v1416_v19 }
 0x4bc   : > { %2117 = vpow2.f32 %v1418_v33 }
 0x4c5   : > { %v2116_v35 = vpop.eup %2115 }
 0x4c6   : > { %v2118_v49 = vpop.eup %2117  ;;  %v1623_v53 = vadd.f32 -1.0, %v2116_v35 }
 0x4c7   : > { %v1624_v40 = vadd.f32 -1.0, %v2118_v49 }
 0x4c8   : > { %v1422_v23 = vsel %vm1414_vm12, %v1412_v13, %v1623_v53 }
 0x4c9   : > { %v1423_v25 = vsel %vm1415_vm13, %v1413_v18, %v1624_v40  ;;  %1424 = vst [vmem:[%s217_s23] sm:$0xff] %v1422_v23 }
 0x4ca   : > { %1425 = vst [vmem:[%s217_s23 + $0x8] sm:$0xff] %v1423_v25 }
 0x4cb   : > { %2134 = shalt.err (!%p2131_p3)
}
 0x4cc   : > { %s2135_s11 = scalar_lea.hbm %s3135_s8, 256  ;;  %s2139_s14 = scalar_lea.hbm %s3185_s5, 512 }
 0x4cd   : > { %p2136_p4 = scmp.ne.s32.totalorder %s3135_s8, %s2135_s11  ;;  %p2140_p9 = scmp.lt.u32.totalorder %s3135_s8, %s3185_s5 }
 0x4ce   : > { %p2141_p10 = scmp.lt.u32.totalorder %s2139_s14, %s2135_s11  ;;  %p2143_p12 = scmp.lt.u32.totalorder %s2135_s11, %s3135_s8 }
 0x4cf   : > { %p2137_p7 = pnand %p2136_p4, %p2259_p5 }
 0x4d0   : > { %p2142_p11 = por %p2141_p10, %p2140_p9 }
 0x4d1   : > { %p2138_p8 = pneg %p2137_p7 }
 0x4d2   : > { %p2144_p13 = por %p2143_p12, %p2142_p11 }
 0x4d4   : > { %p2145_p0 = pnand %p2144_p13, %p2138_p8 }
 0x4d6   : > { %2148 = shalt.err (!%p2145_p0)
}
 0x4d7   : > { %s2189_s17 = smov 128   ;;  %s2190_s23 = smov 8  }
 0x4d8   : > { %2053 = dma.vmem_to_hbm [thread:$0]  (%p2259_p5), %s3137_s25, 256, %s3135_s8, %s3139_s22, %s2189_s17, %s2189_s17, %s2190_s23  }
 0x4d9 PF: > { %p2059_p1 = scmp.ge.s32.totalorder %s2183_s21, 2  ;;  %s1455_s26 = sand.u32 1, %s2171_s18  }
 0x4da   : > { %s1456_s6 = scalar_lea.sflag [#allocation4], %s1455_s26 }
 0x4db   : > { %p2056_p2 = pnand %p2059_p1, %p2263_p6 }
 0x4dd   : > { %2166 = dma.done.wait (!%p2056_p2), %s1456_s6, 256  }
 0x4de   : > { %2168 = vsyncadd (!%p2056_p2), %s1456_s6, 4294967040  ;;  %p15_p3 = scmp.ge.s32.totalorder %s2246_s24, 4   ;;  %s3188_s18 = smov %s2175_s19 }
 0x4df   : > { %s3189_s19 = smov %s2179_s20  ;;  %s3190_s20 = smov %s2257_s27 }
 0x4e0   : > { %s3191_s21 = smov %s2246_s24  ;;  %17 = sbr.rel (!%p15_p3) target bundleno = 3 (0x3), region = 79 }
 0x4e7   :  { %1461 = vsyncpa [#allocation4], 1 }
 0x4e8   :  { %1463 = vsyncpa [#allocation4 + $0x1], 1 }

</bundles_post_ra>
